<compile_context>
chip_gen: v7x
topology: tpu7x:2x2x1
jax: 0.10.0
libtpu: 0.0.40
codegen_flags: <defaults>
</compile_context>

<pallas_src>
import functools

import jax
import jax.numpy as jnp
from jax.experimental import pallas as pl
from jax.experimental.pallas import tpu as pltpu

VOCAB = 100
EMBED = 300
HIDDEN = 128
NCLASS = 2


def _round_up(x, m):
    return ((x + m - 1) // m) * m


def lstm_recurrence_kernel(x_ref, wih_ref, whh_ref, bias_ref, hout_ref,
                           gx_sc, h_sc, c_sc, *, seq_len):
    """One grid step = one (batch tile, time block).

    x_ref   : (T_BLK, B_TILE, E_pad) embedded inputs for this block
    wih_ref : (E_pad, 4H)            input-projection weights (resident)
    whh_ref : (H, 4H)                recurrent weights (resident)
    bias_ref: (1, 4H)                b_ih + b_hh
    hout_ref: (B_TILE, H)            final hidden state for this batch tile
    gx_sc   : (T_BLK*B_TILE, 4H)     fused input-projection scratch
    h_sc/c_sc: (B_TILE, H)           carry across time blocks
    """
    t_blk, b_tile, e_pad = x_ref.shape
    t = pl.program_id(1)

    @pl.when(t == 0)
    def _():
        h_sc[...] = jnp.zeros_like(h_sc)
        c_sc[...] = jnp.zeros_like(c_sc)

    # Fused input projection for the whole time block: one lane-aligned
    # (T_BLK*B_TILE, E_pad) @ (E_pad, 4H) MXU matmul, hidden behind the
    # latency-bound recurrence.  Replaces the HBM round trip of a
    # precomputed gx tensor with a single read of x.
    x_blk = x_ref[...].reshape(t_blk * b_tile, e_pad)
    gx_sc[...] = (jnp.dot(x_blk, wih_ref[...],
                          preferred_element_type=jnp.float32)
                  + bias_ref[...])

    whh = whh_ref[...]                      # hoisted out of the time loop
    needs_mask = (seq_len % t_blk) != 0     # static

    def step(i, carry):
        h, c = carry
        off = pl.multiple_of(i * b_tile, b_tile)
        # PyTorch gate order [i, f, g, o]; each slice lands on a 128-lane boundary.
        gates = (gx_sc[pl.ds(off, b_tile), :]
                 + jnp.dot(h, whh, preferred_element_type=jnp.float32))
        i_g = jax.nn.sigmoid(gates[:, 0 * HIDDEN:1 * HIDDEN])
        f_g = jax.nn.sigmoid(gates[:, 1 * HIDDEN:2 * HIDDEN])
        g_g = jnp.tanh(gates[:, 2 * HIDDEN:3 * HIDDEN])
        o_g = jax.nn.sigmoid(gates[:, 3 * HIDDEN:4 * HIDDEN])
        c_new = f_g * c + i_g * g_g
        h_new = o_g * jnp.tanh(c_new)
        if needs_mask:
            valid = (t * t_blk + i) < seq_len
            h_new = jnp.where(valid, h_new, h)
            c_new = jnp.where(valid, c_new, c)
        return h_new, c_new

    h_f, c_f = jax.lax.fori_loop(0, t_blk, step, (h_sc[...], c_sc[...]),
                                 unroll=True)
    h_sc[...] = h_f
    c_sc[...] = c_f
    # Unconditional lane-dense store; the last time block's value wins.
    hout_ref[...] = h_f


def lstm_forward(sentence, params, *, time_block=128, batch_tile=256):
    """sentence: (seq, batch) int32 token ids -> (batch, 2) logits."""
    emb, w_ih, w_hh, b_ih, b_hh, w_dec, b_dec = (
        params["emb"], params["w_ih"], params["w_hh"], params["b_ih"],
        params["b_hh"], params["w_dec"], params["b_dec"])

    S, B = sentence.shape

    # Embedding lookup (plain-JAX gather glue).
    x = jnp.take(emb, sentence, axis=0)                       # (S, B, EMBED)

    # Batch tiling: pad to sublane multiple of 8; tile at up to `batch_tile`
    # rows so the parallel batch grid axis can be sharded across TensorCores
    # (v7x) and so large batches feed the MXU a tall LHS.
    B_pad = max(8, _round_up(B, 8))
    if B_pad <= batch_tile:
        B_TILE = B_pad
    else:
        B_TILE = batch_tile
        B_pad = _round_up(B_pad, B_TILE)

    # Time blocking: big blocks amortize per-grid-step overhead; tail steps
    # are masked inside the kernel.
    T_BLK = min(S, time_block)
    S_pad = _round_up(S, T_BLK)

    # Pad the embedding axis to a lane multiple (300 -> 384); zero padding
    # contributes nothing to the fused dot.
    E_pad = _round_up(EMBED, 128)
    x = jnp.pad(x, ((0, S_pad - S), (0, B_pad - B), (0, E_pad - EMBED)))

    wih_t = jnp.pad(w_ih.T, ((0, E_pad - EMBED), (0, 0)))     # (E_pad, 4H)
    whh_t = w_hh.T                                            # (H, 4H)
    bias = (b_ih + b_hh).reshape(1, 4 * HIDDEN)               # (1, 4H)

    # Explicit VMEM budget (v7x: 64 MiB physical / 32 MiB scoped default;
    # v5e: 16 MiB scoped default).
    f32b = 4
    vmem_bytes = (2 * T_BLK * B_TILE * E_pad * f32b                 # x stream (double-buffered)
                  + 2 * (E_pad + HIDDEN) * 4 * HIDDEN * f32b        # resident weights
                  + 2 * 4 * HIDDEN * f32b                           # bias
                  + T_BLK * B_TILE * 4 * HIDDEN * f32b              # gx scratch
                  + 2 * B_TILE * HIDDEN * f32b                      # h/c carries
                  + 2 * B_TILE * HIDDEN * f32b                      # output
                  + (8 << 20))                                      # headroom
    vmem_bytes = int(min(vmem_bytes, 100 << 20))

    h_final = pl.pallas_call(
        functools.partial(lstm_recurrence_kernel, seq_len=S),
        out_shape=jax.ShapeDtypeStruct((B_pad, HIDDEN), jnp.float32),
        grid_spec=pltpu.PrefetchScalarGridSpec(
            num_scalar_prefetch=0,
            grid=(B_pad // B_TILE, S_pad // T_BLK),
            in_specs=[
                pl.BlockSpec((T_BLK, B_TILE, E_pad), lambda b, t: (t, b, 0)),
                pl.BlockSpec((E_pad, 4 * HIDDEN), lambda b, t: (0, 0)),
                pl.BlockSpec((HIDDEN, 4 * HIDDEN), lambda b, t: (0, 0)),
                pl.BlockSpec((1, 4 * HIDDEN), lambda b, t: (0, 0)),
            ],
            out_specs=pl.BlockSpec((B_TILE, HIDDEN), lambda b, t: (b, 0)),
            scratch_shapes=[
                pltpu.VMEM((T_BLK * B_TILE, 4 * HIDDEN), jnp.float32),  # gx
                pltpu.VMEM((B_TILE, HIDDEN), jnp.float32),              # h carry
                pltpu.VMEM((B_TILE, HIDDEN), jnp.float32),              # c carry
            ],
        ),
        compiler_params=pltpu.CompilerParams(
            # batch is embarrassingly parallel (2 TCs on v7x); time is serial.
            dimension_semantics=("parallel", "arbitrary"),
            vmem_limit_bytes=vmem_bytes),
    )(x, wih_t, whh_t, bias)

    # Drop padded batch rows; tiny 128->2 decoder stays in JAX (lane-dense
    # kernel output, no masked 2-wide stores inside the kernel).
    h_final = h_final[:B]
    return jnp.dot(h_final, w_dec.T) + b_dec


def reference_forward(sentence, params):
    """Pure-JAX reference matching PyTorch semantics."""
    emb, w_ih, w_hh, b_ih, b_hh, w_dec, b_dec = (
        params["emb"], params["w_ih"], params["w_hh"], params["b_ih"],
        params["b_hh"], params["w_dec"], params["b_dec"])
    x = jnp.take(emb, sentence, axis=0)
    S, B, _ = x.shape
    h = jnp.zeros((B, HIDDEN), jnp.float32)
    c = jnp.zeros((B, HIDDEN), jnp.float32)

    def step(carry, x_t):
        h, c = carry
        gates = x_t @ w_ih.T + b_ih + h @ w_hh.T + b_hh
        i = jax.nn.sigmoid(gates[:, 0 * HIDDEN:1 * HIDDEN])
        f = jax.nn.sigmoid(gates[:, 1 * HIDDEN:2 * HIDDEN])
        g = jnp.tanh(gates[:, 2 * HIDDEN:3 * HIDDEN])
        o = jax.nn.sigmoid(gates[:, 3 * HIDDEN:4 * HIDDEN])
        c = f * c + i * g
        h = o * jnp.tanh(c)
        return (h, c), h

    (h, c), _ = jax.lax.scan(step, (h, c), x)
    return h @ w_dec.T + b_dec


def init_params(key):
    ks = jax.random.split(key, 7)
    scale = 0.05
    return {
        "emb":   jax.random.normal(ks[0], (VOCAB, EMBED), jnp.float32) * scale,
        "w_ih":  jax.random.normal(ks[1], (4 * HIDDEN, EMBED), jnp.float32) * scale,
        "w_hh":  jax.random.normal(ks[2], (4 * HIDDEN, HIDDEN), jnp.float32) * scale,
        "b_ih":  jax.random.normal(ks[3], (4 * HIDDEN,), jnp.float32) * scale,
        "b_hh":  jax.random.normal(ks[4], (4 * HIDDEN,), jnp.float32) * scale,
        "w_dec": jax.random.normal(ks[5], (NCLASS, HIDDEN), jnp.float32) * scale,
        "b_dec": jax.random.normal(ks[6], (NCLASS,), jnp.float32) * scale,
    }


if __name__ == "__main__":
    key = jax.random.PRNGKey(0)
    pkey, skey = jax.random.split(key)
    params = init_params(pkey)

    SEQ, BATCH = 8, 2
    sentence = jax.random.randint(skey, (SEQ, BATCH), 0, VOCAB, dtype=jnp.int32)

    out = jax.block_until_ready(lstm_forward(sentence, params))
    ref = jax.block_until_ready(reference_forward(sentence, params))

    assert out.shape == (BATCH, NCLASS)
    assert jnp.allclose(out, ref, atol=1e-4, rtol=1e-4), (out, ref)

    print("KERNEL_OK")
</pallas_src>

<mosaic_0001>
module attributes {stable_mosaic.version = 11 : i64} {
  func.func @lstm_recurrence_kernel(%arg0: i32, %arg1: i32, %arg2: memref<8x8x384xf32, #tpu.memory_space<vmem>>, %arg3: memref<384x512xf32, #tpu.memory_space<vmem>>, %arg4: memref<128x512xf32, #tpu.memory_space<vmem>>, %arg5: memref<1x512xf32, #tpu.memory_space<vmem>>, %arg6: memref<8x128xf32, #tpu.memory_space<vmem>>, %arg7: memref<64x512xf32, #tpu.memory_space<vmem>>, %arg8: memref<8x128xf32, #tpu.memory_space<vmem>>, %arg9: memref<8x128xf32, #tpu.memory_space<vmem>>) attributes {dimension_semantics = [#tpu.dimension_semantics<parallel>, #tpu.dimension_semantics<arbitrary>], iteration_bounds = array<i64: 1, 1>, scalar_prefetch = 0 : i64, scratch_operands = 3 : i64, tpu.core_type = #tpu.core_type<tc>, window_params = [{transform_indices = @transform_0, window_bounds = array<i64: 8, 8, 384>}, {pipeline_mode = #tpu.pipeline_mode<synchronous>, transform_indices = @transform_1, window_bounds = array<i64: 384, 512>}, {pipeline_mode = #tpu.pipeline_mode<synchronous>, transform_indices = @transform_2, window_bounds = array<i64: 128, 512>}, {pipeline_mode = #tpu.pipeline_mode<synchronous>, transform_indices = @transform_3, window_bounds = array<i64: 1, 512>}, {transform_indices = @transform_4, window_bounds = array<i64: 8, 128>}]} {
    %c0_i32 = arith.constant 0 : i32
    %0 = arith.cmpi eq, %arg1, %c0_i32 : i32
    %1 = arith.extui %0 : i1 to i32
    %c0_i32_0 = arith.constant 0 : i32
    %2 = arith.cmpi ne, %1, %c0_i32_0 : i32
    scf.if %2 {
      %cst_70 = arith.constant 0.000000e+00 : f32
      %265 = vector.broadcast %cst_70 : f32 to vector<8x128xf32>
      %c0_71 = arith.constant 0 : index
      %c0_72 = arith.constant 0 : index
      %266 = vector.load %arg8[%c0_71, %c0_72] : memref<8x128xf32, #tpu.memory_space<vmem>>, vector<8x128xf32>
      tpu.vector_store %arg8[%c0_71, %c0_72], %265 {strides = array<i32>} : memref<8x128xf32, #tpu.memory_space<vmem>>, vector<8x128xf32>,
      %cst_73 = arith.constant 0.000000e+00 : f32
      %267 = vector.broadcast %cst_73 : f32 to vector<8x128xf32>
      %c0_74 = arith.constant 0 : index
      %c0_75 = arith.constant 0 : index
      %268 = vector.load %arg9[%c0_74, %c0_75] : memref<8x128xf32, #tpu.memory_space<vmem>>, vector<8x128xf32>
      tpu.vector_store %arg9[%c0_74, %c0_75], %267 {strides = array<i32>} : memref<8x128xf32, #tpu.memory_space<vmem>>, vector<8x128xf32>,
    } else {
    }
    %c0 = arith.constant 0 : index
    %c0_1 = arith.constant 0 : index
    %c0_2 = arith.constant 0 : index
    %3 = vector.load %arg2[%c0, %c0_1, %c0_2] : memref<8x8x384xf32, #tpu.memory_space<vmem>>, vector<8x8x384xf32>
    %4 = vector.shape_cast %3 : vector<8x8x384xf32> to vector<64x384xf32>
    %c0_3 = arith.constant 0 : index
    %c0_4 = arith.constant 0 : index
    %5 = vector.load %arg3[%c0_3, %c0_4] : memref<384x512xf32, #tpu.memory_space<vmem>>, vector<384x512xf32>
    %cst = arith.constant dense<0.000000e+00> : vector<64x512xf32>
    %6 = tpu.matmul %4, %5, %cst {dimension_numbers = #tpu.dot_dimension_numbers<[1], [0], [0], [1], [0, 0, 1, 1], [], []>} : vector<64x384xf32>, vector<384x512xf32>, vector<64x512xf32> -> vector<64x512xf32>
    %c0_5 = arith.constant 0 : index
    %c0_6 = arith.constant 0 : index
    %7 = vector.load %arg5[%c0_5, %c0_6] : memref<1x512xf32, #tpu.memory_space<vmem>>, vector<1x512xf32>
    %8 = vector.broadcast %7 : vector<1x512xf32> to vector<64x512xf32>
    %9 = arith.addf %6, %8 : vector<64x512xf32>
    %c0_7 = arith.constant 0 : index
    %c0_8 = arith.constant 0 : index
    %10 = vector.load %arg7[%c0_7, %c0_8] : memref<64x512xf32, #tpu.memory_space<vmem>>, vector<64x512xf32>
    tpu.vector_store %arg7[%c0_7, %c0_8], %9 {strides = array<i32>} : memref<64x512xf32, #tpu.memory_space<vmem>>, vector<64x512xf32>,
    %c0_9 = arith.constant 0 : index
    %c0_10 = arith.constant 0 : index
    %11 = vector.load %arg4[%c0_9, %c0_10] : memref<128x512xf32, #tpu.memory_space<vmem>>, vector<128x512xf32>
    %c0_11 = arith.constant 0 : index
    %c0_12 = arith.constant 0 : index
    %12 = vector.load %arg8[%c0_11, %c0_12] : memref<8x128xf32, #tpu.memory_space<vmem>>, vector<8x128xf32>
    %c0_13 = arith.constant 0 : index
    %c0_14 = arith.constant 0 : index
    %13 = vector.load %arg9[%c0_13, %c0_14] : memref<8x128xf32, #tpu.memory_space<vmem>>, vector<8x128xf32>
    %c0_i32_15 = arith.constant 0 : i32
    %c8_i32 = arith.constant 8 : i32
    %14 = arith.muli %c0_i32_15, %c8_i32 : i32
    %15 = tpu.assume_multiple %14, 8 : i32
    %16 = arith.index_cast %15 : i32 to index
    %c0_16 = arith.constant 0 : index
    %17 = vector.load %arg7[%16, %c0_16] : memref<64x512xf32, #tpu.memory_space<vmem>>, vector<8x512xf32>
    %cst_17 = arith.constant dense<0.000000e+00> : vector<8x512xf32>
    %18 = tpu.matmul %12, %11, %cst_17 {dimension_numbers = #tpu.dot_dimension_numbers<[1], [0], [0], [1], [0, 0, 1, 1], [], []>} : vector<8x128xf32>, vector<128x512xf32>, vector<8x512xf32> -> vector<8x512xf32>
    %19 = arith.addf %17, %18 : vector<8x512xf32>
    %20 = vector.extract_strided_slice %19 {offsets = [0, 0], sizes = [8, 128], strides = [1, 1]} : vector<8x512xf32> to vector<8x128xf32>
    %21 = arith.negf %20 : vector<8x128xf32>
    %22 = math.exp %21 : vector<8x128xf32>
    %cst_18 = arith.constant 1.000000e+00 : f32
    %23 = vector.broadcast %cst_18 : f32 to vector<8x128xf32>
    %24 = arith.addf %23, %22 : vector<8x128xf32>
    %25 = arith.divf %23, %24 : vector<8x128xf32>
    %26 = vector.extract_strided_slice %19 {offsets = [0, 128], sizes = [8, 128], strides = [1, 1]} : vector<8x512xf32> to vector<8x128xf32>
    %27 = arith.negf %26 : vector<8x128xf32>
    %28 = math.exp %27 : vector<8x128xf32>
    %cst_19 = arith.constant 1.000000e+00 : f32
    %29 = vector.broadcast %cst_19 : f32 to vector<8x128xf32>
    %30 = arith.addf %29, %28 : vector<8x128xf32>
    %31 = arith.divf %29, %30 : vector<8x128xf32>
    %32 = vector.extract_strided_slice %19 {offsets = [0, 256], sizes = [8, 128], strides = [1, 1]} : vector<8x512xf32> to vector<8x128xf32>
    %33 = math.tanh %32 : vector<8x128xf32>
    %34 = vector.extract_strided_slice %19 {offsets = [0, 384], sizes = [8, 128], strides = [1, 1]} : vector<8x512xf32> to vector<8x128xf32>
    %35 = arith.negf %34 : vector<8x128xf32>
    %36 = math.exp %35 : vector<8x128xf32>
    %cst_20 = arith.constant 1.000000e+00 : f32
    %37 = vector.broadcast %cst_20 : f32 to vector<8x128xf32>
    %38 = arith.addf %37, %36 : vector<8x128xf32>
    %39 = arith.divf %37, %38 : vector<8x128xf32>
    %40 = arith.mulf %31, %13 : vector<8x128xf32>
    %41 = arith.mulf %25, %33 : vector<8x128xf32>
    %42 = arith.addf %40, %41 : vector<8x128xf32>
    %43 = math.tanh %42 : vector<8x128xf32>
    %44 = arith.mulf %39, %43 : vector<8x128xf32>
    %c1_i32 = arith.constant 1 : i32
    %c8_i32_21 = arith.constant 8 : i32
    %45 = arith.muli %c1_i32, %c8_i32_21 : i32
    %46 = tpu.assume_multiple %45, 8 : i32
    %47 = arith.index_cast %46 : i32 to index
    %c0_22 = arith.constant 0 : index
    %48 = vector.load %arg7[%47, %c0_22] : memref<64x512xf32, #tpu.memory_space<vmem>>, vector<8x512xf32>
    %cst_23 = arith.constant dense<0.000000e+00> : vector<8x512xf32>
    %49 = tpu.matmul %44, %11, %cst_23 {dimension_numbers = #tpu.dot_dimension_numbers<[1], [0], [0], [1], [0, 0, 1, 1], [], []>} : vector<8x128xf32>, vector<128x512xf32>, vector<8x512xf32> -> vector<8x512xf32>
    %50 = arith.addf %48, %49 : vector<8x512xf32>
    %51 = vector.extract_strided_slice %50 {offsets = [0, 0], sizes = [8, 128], strides = [1, 1]} : vector<8x512xf32> to vector<8x128xf32>
    %52 = arith.negf %51 : vector<8x128xf32>
    %53 = math.exp %52 : vector<8x128xf32>
    %cst_24 = arith.constant 1.000000e+00 : f32
    %54 = vector.broadcast %cst_24 : f32 to vector<8x128xf32>
    %55 = arith.addf %54, %53 : vector<8x128xf32>
    %56 = arith.divf %54, %55 : vector<8x128xf32>
    %57 = vector.extract_strided_slice %50 {offsets = [0, 128], sizes = [8, 128], strides = [1, 1]} : vector<8x512xf32> to vector<8x128xf32>
    %58 = arith.negf %57 : vector<8x128xf32>
    %59 = math.exp %58 : vector<8x128xf32>
    %cst_25 = arith.constant 1.000000e+00 : f32
    %60 = vector.broadcast %cst_25 : f32 to vector<8x128xf32>
    %61 = arith.addf %60, %59 : vector<8x128xf32>
    %62 = arith.divf %60, %61 : vector<8x128xf32>
    %63 = vector.extract_strided_slice %50 {offsets = [0, 256], sizes = [8, 128], strides = [1, 1]} : vector<8x512xf32> to vector<8x128xf32>
    %64 = math.tanh %63 : vector<8x128xf32>
    %65 = vector.extract_strided_slice %50 {offsets = [0, 384], sizes = [8, 128], strides = [1, 1]} : vector<8x512xf32> to vector<8x128xf32>
    %66 = arith.negf %65 : vector<8x128xf32>
    %67 = math.exp %66 : vector<8x128xf32>
    %cst_26 = arith.constant 1.000000e+00 : f32
    %68 = vector.broadcast %cst_26 : f32 to vector<8x128xf32>
    %69 = arith.addf %68, %67 : vector<8x128xf32>
    %70 = arith.divf %68, %69 : vector<8x128xf32>
    %71 = arith.mulf %62, %42 : vector<8x128xf32>
    %72 = arith.mulf %56, %64 : vector<8x128xf32>
    %73 = arith.addf %71, %72 : vector<8x128xf32>
    %74 = math.tanh %73 : vector<8x128xf32>
    %75 = arith.mulf %70, %74 : vector<8x128xf32>
    %c2_i32 = arith.constant 2 : i32
    %c8_i32_27 = arith.constant 8 : i32
    %76 = arith.muli %c2_i32, %c8_i32_27 : i32
    %77 = tpu.assume_multiple %76, 8 : i32
    %78 = arith.index_cast %77 : i32 to index
    %c0_28 = arith.constant 0 : index
    %79 = vector.load %arg7[%78, %c0_28] : memref<64x512xf32, #tpu.memory_space<vmem>>, vector<8x512xf32>
    %cst_29 = arith.constant dense<0.000000e+00> : vector<8x512xf32>
    %80 = tpu.matmul %75, %11, %cst_29 {dimension_numbers = #tpu.dot_dimension_numbers<[1], [0], [0], [1], [0, 0, 1, 1], [], []>} : vector<8x128xf32>, vector<128x512xf32>, vector<8x512xf32> -> vector<8x512xf32>
    %81 = arith.addf %79, %80 : vector<8x512xf32>
    %82 = vector.extract_strided_slice %81 {offsets = [0, 0], sizes = [8, 128], strides = [1, 1]} : vector<8x512xf32> to vector<8x128xf32>
    %83 = arith.negf %82 : vector<8x128xf32>
    %84 = math.exp %83 : vector<8x128xf32>
    %cst_30 = arith.constant 1.000000e+00 : f32
    %85 = vector.broadcast %cst_30 : f32 to vector<8x128xf32>
    %86 = arith.addf %85, %84 : vector<8x128xf32>
    %87 = arith.divf %85, %86 : vector<8x128xf32>
    %88 = vector.extract_strided_slice %81 {offsets = [0, 128], sizes = [8, 128], strides = [1, 1]} : vector<8x512xf32> to vector<8x128xf32>
    %89 = arith.negf %88 : vector<8x128xf32>
    %90 = math.exp %89 : vector<8x128xf32>
    %cst_31 = arith.constant 1.000000e+00 : f32
    %91 = vector.broadcast %cst_31 : f32 to vector<8x128xf32>
    %92 = arith.addf %91, %90 : vector<8x128xf32>
    %93 = arith.divf %91, %92 : vector<8x128xf32>
    %94 = vector.extract_strided_slice %81 {offsets = [0, 256], sizes = [8, 128], strides = [1, 1]} : vector<8x512xf32> to vector<8x128xf32>
    %95 = math.tanh %94 : vector<8x128xf32>
    %96 = vector.extract_strided_slice %81 {offsets = [0, 384], sizes = [8, 128], strides = [1, 1]} : vector<8x512xf32> to vector<8x128xf32>
    %97 = arith.negf %96 : vector<8x128xf32>
    %98 = math.exp %97 : vector<8x128xf32>
    %cst_32 = arith.constant 1.000000e+00 : f32
    %99 = vector.broadcast %cst_32 : f32 to vector<8x128xf32>
    %100 = arith.addf %99, %98 : vector<8x128xf32>
    %101 = arith.divf %99, %100 : vector<8x128xf32>
    %102 = arith.mulf %93, %73 : vector<8x128xf32>
    %103 = arith.mulf %87, %95 : vector<8x128xf32>
    %104 = arith.addf %102, %103 : vector<8x128xf32>
    %105 = math.tanh %104 : vector<8x128xf32>
    %106 = arith.mulf %101, %105 : vector<8x128xf32>
    %c3_i32 = arith.constant 3 : i32
    %c8_i32_33 = arith.constant 8 : i32
    %107 = arith.muli %c3_i32, %c8_i32_33 : i32
    %108 = tpu.assume_multiple %107, 8 : i32
    %109 = arith.index_cast %108 : i32 to index
    %c0_34 = arith.constant 0 : index
    %110 = vector.load %arg7[%109, %c0_34] : memref<64x512xf32, #tpu.memory_space<vmem>>, vector<8x512xf32>
    %cst_35 = arith.constant dense<0.000000e+00> : vector<8x512xf32>
    %111 = tpu.matmul %106, %11, %cst_35 {dimension_numbers = #tpu.dot_dimension_numbers<[1], [0], [0], [1], [0, 0, 1, 1], [], []>} : vector<8x128xf32>, vector<128x512xf32>, vector<8x512xf32> -> vector<8x512xf32>
    %112 = arith.addf %110, %111 : vector<8x512xf32>
    %113 = vector.extract_strided_slice %112 {offsets = [0, 0], sizes = [8, 128], strides = [1, 1]} : vector<8x512xf32> to vector<8x128xf32>
    %114 = arith.negf %113 : vector<8x128xf32>
    %115 = math.exp %114 : vector<8x128xf32>
    %cst_36 = arith.constant 1.000000e+00 : f32
    %116 = vector.broadcast %cst_36 : f32 to vector<8x128xf32>
    %117 = arith.addf %116, %115 : vector<8x128xf32>
    %118 = arith.divf %116, %117 : vector<8x128xf32>
    %119 = vector.extract_strided_slice %112 {offsets = [0, 128], sizes = [8, 128], strides = [1, 1]} : vector<8x512xf32> to vector<8x128xf32>
    %120 = arith.negf %119 : vector<8x128xf32>
    %121 = math.exp %120 : vector<8x128xf32>
    %cst_37 = arith.constant 1.000000e+00 : f32
    %122 = vector.broadcast %cst_37 : f32 to vector<8x128xf32>
    %123 = arith.addf %122, %121 : vector<8x128xf32>
    %124 = arith.divf %122, %123 : vector<8x128xf32>
    %125 = vector.extract_strided_slice %112 {offsets = [0, 256], sizes = [8, 128], strides = [1, 1]} : vector<8x512xf32> to vector<8x128xf32>
    %126 = math.tanh %125 : vector<8x128xf32>
    %127 = vector.extract_strided_slice %112 {offsets = [0, 384], sizes = [8, 128], strides = [1, 1]} : vector<8x512xf32> to vector<8x128xf32>
    %128 = arith.negf %127 : vector<8x128xf32>
    %129 = math.exp %128 : vector<8x128xf32>
    %cst_38 = arith.constant 1.000000e+00 : f32
    %130 = vector.broadcast %cst_38 : f32 to vector<8x128xf32>
    %131 = arith.addf %130, %129 : vector<8x128xf32>
    %132 = arith.divf %130, %131 : vector<8x128xf32>
    %133 = arith.mulf %124, %104 : vector<8x128xf32>
    %134 = arith.mulf %118, %126 : vector<8x128xf32>
    %135 = arith.addf %133, %134 : vector<8x128xf32>
    %136 = math.tanh %135 : vector<8x128xf32>
    %137 = arith.mulf %132, %136 : vector<8x128xf32>
    %c4_i32 = arith.constant 4 : i32
    %c8_i32_39 = arith.constant 8 : i32
    %138 = arith.muli %c4_i32, %c8_i32_39 : i32
    %139 = tpu.assume_multiple %138, 8 : i32
    %140 = arith.index_cast %139 : i32 to index
    %c0_40 = arith.constant 0 : index
    %141 = vector.load %arg7[%140, %c0_40] : memref<64x512xf32, #tpu.memory_space<vmem>>, vector<8x512xf32>
    %cst_41 = arith.constant dense<0.000000e+00> : vector<8x512xf32>
    %142 = tpu.matmul %137, %11, %cst_41 {dimension_numbers = #tpu.dot_dimension_numbers<[1], [0], [0], [1], [0, 0, 1, 1], [], []>} : vector<8x128xf32>, vector<128x512xf32>, vector<8x512xf32> -> vector<8x512xf32>
    %143 = arith.addf %141, %142 : vector<8x512xf32>
    %144 = vector.extract_strided_slice %143 {offsets = [0, 0], sizes = [8, 128], strides = [1, 1]} : vector<8x512xf32> to vector<8x128xf32>
    %145 = arith.negf %144 : vector<8x128xf32>
    %146 = math.exp %145 : vector<8x128xf32>
    %cst_42 = arith.constant 1.000000e+00 : f32
    %147 = vector.broadcast %cst_42 : f32 to vector<8x128xf32>
    %148 = arith.addf %147, %146 : vector<8x128xf32>
    %149 = arith.divf %147, %148 : vector<8x128xf32>
    %150 = vector.extract_strided_slice %143 {offsets = [0, 128], sizes = [8, 128], strides = [1, 1]} : vector<8x512xf32> to vector<8x128xf32>
    %151 = arith.negf %150 : vector<8x128xf32>
    %152 = math.exp %151 : vector<8x128xf32>
    %cst_43 = arith.constant 1.000000e+00 : f32
    %153 = vector.broadcast %cst_43 : f32 to vector<8x128xf32>
    %154 = arith.addf %153, %152 : vector<8x128xf32>
    %155 = arith.divf %153, %154 : vector<8x128xf32>
    %156 = vector.extract_strided_slice %143 {offsets = [0, 256], sizes = [8, 128], strides = [1, 1]} : vector<8x512xf32> to vector<8x128xf32>
    %157 = math.tanh %156 : vector<8x128xf32>
    %158 = vector.extract_strided_slice %143 {offsets = [0, 384], sizes = [8, 128], strides = [1, 1]} : vector<8x512xf32> to vector<8x128xf32>
    %159 = arith.negf %158 : vector<8x128xf32>
    %160 = math.exp %159 : vector<8x128xf32>
    %cst_44 = arith.constant 1.000000e+00 : f32
    %161 = vector.broadcast %cst_44 : f32 to vector<8x128xf32>
    %162 = arith.addf %161, %160 : vector<8x128xf32>
    %163 = arith.divf %161, %162 : vector<8x128xf32>
    %164 = arith.mulf %155, %135 : vector<8x128xf32>
    %165 = arith.mulf %149, %157 : vector<8x128xf32>
    %166 = arith.addf %164, %165 : vector<8x128xf32>
    %167 = math.tanh %166 : vector<8x128xf32>
    %168 = arith.mulf %163, %167 : vector<8x128xf32>
    %c5_i32 = arith.constant 5 : i32
    %c8_i32_45 = arith.constant 8 : i32
    %169 = arith.muli %c5_i32, %c8_i32_45 : i32
    %170 = tpu.assume_multiple %169, 8 : i32
    %171 = arith.index_cast %170 : i32 to index
    %c0_46 = arith.constant 0 : index
    %172 = vector.load %arg7[%171, %c0_46] : memref<64x512xf32, #tpu.memory_space<vmem>>, vector<8x512xf32>
    %cst_47 = arith.constant dense<0.000000e+00> : vector<8x512xf32>
    %173 = tpu.matmul %168, %11, %cst_47 {dimension_numbers = #tpu.dot_dimension_numbers<[1], [0], [0], [1], [0, 0, 1, 1], [], []>} : vector<8x128xf32>, vector<128x512xf32>, vector<8x512xf32> -> vector<8x512xf32>
    %174 = arith.addf %172, %173 : vector<8x512xf32>
    %175 = vector.extract_strided_slice %174 {offsets = [0, 0], sizes = [8, 128], strides = [1, 1]} : vector<8x512xf32> to vector<8x128xf32>
    %176 = arith.negf %175 : vector<8x128xf32>
    %177 = math.exp %176 : vector<8x128xf32>
    %cst_48 = arith.constant 1.000000e+00 : f32
    %178 = vector.broadcast %cst_48 : f32 to vector<8x128xf32>
    %179 = arith.addf %178, %177 : vector<8x128xf32>
    %180 = arith.divf %178, %179 : vector<8x128xf32>
    %181 = vector.extract_strided_slice %174 {offsets = [0, 128], sizes = [8, 128], strides = [1, 1]} : vector<8x512xf32> to vector<8x128xf32>
    %182 = arith.negf %181 : vector<8x128xf32>
    %183 = math.exp %182 : vector<8x128xf32>
    %cst_49 = arith.constant 1.000000e+00 : f32
    %184 = vector.broadcast %cst_49 : f32 to vector<8x128xf32>
    %185 = arith.addf %184, %183 : vector<8x128xf32>
    %186 = arith.divf %184, %185 : vector<8x128xf32>
    %187 = vector.extract_strided_slice %174 {offsets = [0, 256], sizes = [8, 128], strides = [1, 1]} : vector<8x512xf32> to vector<8x128xf32>
    %188 = math.tanh %187 : vector<8x128xf32>
    %189 = vector.extract_strided_slice %174 {offsets = [0, 384], sizes = [8, 128], strides = [1, 1]} : vector<8x512xf32> to vector<8x128xf32>
    %190 = arith.negf %189 : vector<8x128xf32>
    %191 = math.exp %190 : vector<8x128xf32>
    %cst_50 = arith.constant 1.000000e+00 : f32
    %192 = vector.broadcast %cst_50 : f32 to vector<8x128xf32>
    %193 = arith.addf %192, %191 : vector<8x128xf32>
    %194 = arith.divf %192, %193 : vector<8x128xf32>
    %195 = arith.mulf %186, %166 : vector<8x128xf32>
    %196 = arith.mulf %180, %188 : vector<8x128xf32>
    %197 = arith.addf %195, %196 : vector<8x128xf32>
    %198 = math.tanh %197 : vector<8x128xf32>
    %199 = arith.mulf %194, %198 : vector<8x128xf32>
    %c6_i32 = arith.constant 6 : i32
    %c8_i32_51 = arith.constant 8 : i32
    %200 = arith.muli %c6_i32, %c8_i32_51 : i32
    %201 = tpu.assume_multiple %200, 8 : i32
    %202 = arith.index_cast %201 : i32 to index
    %c0_52 = arith.constant 0 : index
    %203 = vector.load %arg7[%202, %c0_52] : memref<64x512xf32, #tpu.memory_space<vmem>>, vector<8x512xf32>
    %cst_53 = arith.constant dense<0.000000e+00> : vector<8x512xf32>
    %204 = tpu.matmul %199, %11, %cst_53 {dimension_numbers = #tpu.dot_dimension_numbers<[1], [0], [0], [1], [0, 0, 1, 1], [], []>} : vector<8x128xf32>, vector<128x512xf32>, vector<8x512xf32> -> vector<8x512xf32>
    %205 = arith.addf %203, %204 : vector<8x512xf32>
    %206 = vector.extract_strided_slice %205 {offsets = [0, 0], sizes = [8, 128], strides = [1, 1]} : vector<8x512xf32> to vector<8x128xf32>
    %207 = arith.negf %206 : vector<8x128xf32>
    %208 = math.exp %207 : vector<8x128xf32>
    %cst_54 = arith.constant 1.000000e+00 : f32
    %209 = vector.broadcast %cst_54 : f32 to vector<8x128xf32>
    %210 = arith.addf %209, %208 : vector<8x128xf32>
    %211 = arith.divf %209, %210 : vector<8x128xf32>
    %212 = vector.extract_strided_slice %205 {offsets = [0, 128], sizes = [8, 128], strides = [1, 1]} : vector<8x512xf32> to vector<8x128xf32>
    %213 = arith.negf %212 : vector<8x128xf32>
    %214 = math.exp %213 : vector<8x128xf32>
    %cst_55 = arith.constant 1.000000e+00 : f32
    %215 = vector.broadcast %cst_55 : f32 to vector<8x128xf32>
    %216 = arith.addf %215, %214 : vector<8x128xf32>
    %217 = arith.divf %215, %216 : vector<8x128xf32>
    %218 = vector.extract_strided_slice %205 {offsets = [0, 256], sizes = [8, 128], strides = [1, 1]} : vector<8x512xf32> to vector<8x128xf32>
    %219 = math.tanh %218 : vector<8x128xf32>
    %220 = vector.extract_strided_slice %205 {offsets = [0, 384], sizes = [8, 128], strides = [1, 1]} : vector<8x512xf32> to vector<8x128xf32>
    %221 = arith.negf %220 : vector<8x128xf32>
    %222 = math.exp %221 : vector<8x128xf32>
    %cst_56 = arith.constant 1.000000e+00 : f32
    %223 = vector.broadcast %cst_56 : f32 to vector<8x128xf32>
    %224 = arith.addf %223, %222 : vector<8x128xf32>
    %225 = arith.divf %223, %224 : vector<8x128xf32>
    %226 = arith.mulf %217, %197 : vector<8x128xf32>
    %227 = arith.mulf %211, %219 : vector<8x128xf32>
    %228 = arith.addf %226, %227 : vector<8x128xf32>
    %229 = math.tanh %228 : vector<8x128xf32>
    %230 = arith.mulf %225, %229 : vector<8x128xf32>
    %c7_i32 = arith.constant 7 : i32
    %c8_i32_57 = arith.constant 8 : i32
    %231 = arith.muli %c7_i32, %c8_i32_57 : i32
    %232 = tpu.assume_multiple %231, 8 : i32
    %233 = arith.index_cast %232 : i32 to index
    %c0_58 = arith.constant 0 : index
    %234 = vector.load %arg7[%233, %c0_58] : memref<64x512xf32, #tpu.memory_space<vmem>>, vector<8x512xf32>
    %cst_59 = arith.constant dense<0.000000e+00> : vector<8x512xf32>
    %235 = tpu.matmul %230, %11, %cst_59 {dimension_numbers = #tpu.dot_dimension_numbers<[1], [0], [0], [1], [0, 0, 1, 1], [], []>} : vector<8x128xf32>, vector<128x512xf32>, vector<8x512xf32> -> vector<8x512xf32>
    %236 = arith.addf %234, %235 : vector<8x512xf32>
    %237 = vector.extract_strided_slice %236 {offsets = [0, 0], sizes = [8, 128], strides = [1, 1]} : vector<8x512xf32> to vector<8x128xf32>
    %238 = arith.negf %237 : vector<8x128xf32>
    %239 = math.exp %238 : vector<8x128xf32>
    %cst_60 = arith.constant 1.000000e+00 : f32
    %240 = vector.broadcast %cst_60 : f32 to vector<8x128xf32>
    %241 = arith.addf %240, %239 : vector<8x128xf32>
    %242 = arith.divf %240, %241 : vector<8x128xf32>
    %243 = vector.extract_strided_slice %236 {offsets = [0, 128], sizes = [8, 128], strides = [1, 1]} : vector<8x512xf32> to vector<8x128xf32>
    %244 = arith.negf %243 : vector<8x128xf32>
    %245 = math.exp %244 : vector<8x128xf32>
    %cst_61 = arith.constant 1.000000e+00 : f32
    %246 = vector.broadcast %cst_61 : f32 to vector<8x128xf32>
    %247 = arith.addf %246, %245 : vector<8x128xf32>
    %248 = arith.divf %246, %247 : vector<8x128xf32>
    %249 = vector.extract_strided_slice %236 {offsets = [0, 256], sizes = [8, 128], strides = [1, 1]} : vector<8x512xf32> to vector<8x128xf32>
    %250 = math.tanh %249 : vector<8x128xf32>
    %251 = vector.extract_strided_slice %236 {offsets = [0, 384], sizes = [8, 128], strides = [1, 1]} : vector<8x512xf32> to vector<8x128xf32>
    %252 = arith.negf %251 : vector<8x128xf32>
    %253 = math.exp %252 : vector<8x128xf32>
    %cst_62 = arith.constant 1.000000e+00 : f32
    %254 = vector.broadcast %cst_62 : f32 to vector<8x128xf32>
    %255 = arith.addf %254, %253 : vector<8x128xf32>
    %256 = arith.divf %254, %255 : vector<8x128xf32>
    %257 = arith.mulf %248, %228 : vector<8x128xf32>
    %258 = arith.mulf %242, %250 : vector<8x128xf32>
    %259 = arith.addf %257, %258 : vector<8x128xf32>
    %260 = math.tanh %259 : vector<8x128xf32>
    %261 = arith.mulf %256, %260 : vector<8x128xf32>
    %c8_i32_63 = arith.constant 8 : i32
    %c0_64 = arith.constant 0 : index
    %c0_65 = arith.constant 0 : index
    %262 = vector.load %arg8[%c0_64, %c0_65] : memref<8x128xf32, #tpu.memory_space<vmem>>, vector<8x128xf32>
    tpu.vector_store %arg8[%c0_64, %c0_65], %261 {strides = array<i32>} : memref<8x128xf32, #tpu.memory_space<vmem>>, vector<8x128xf32>,
    %c0_66 = arith.constant 0 : index
    %c0_67 = arith.constant 0 : index
    %263 = vector.load %arg9[%c0_66, %c0_67] : memref<8x128xf32, #tpu.memory_space<vmem>>, vector<8x128xf32>
    tpu.vector_store %arg9[%c0_66, %c0_67], %259 {strides = array<i32>} : memref<8x128xf32, #tpu.memory_space<vmem>>, vector<8x128xf32>,
    %c0_68 = arith.constant 0 : index
    %c0_69 = arith.constant 0 : index
    %264 = vector.load %arg6[%c0_68, %c0_69] : memref<8x128xf32, #tpu.memory_space<vmem>>, vector<8x128xf32>
    tpu.vector_store %arg6[%c0_68, %c0_69], %261 {strides = array<i32>} : memref<8x128xf32, #tpu.memory_space<vmem>>, vector<8x128xf32>,
    return
  }
  func.func @transform_0(%arg0: i32, %arg1: i32) -> (i32, i32, i32) {
    %c0_i32 = arith.constant 0 : i32
    %c0_i32_0 = arith.constant 0 : i32
    return %arg1, %arg0, %c0_i32 : i32, i32, i32
  }
  func.func @transform_1(%arg0: i32, %arg1: i32) -> (i32, i32) {
    %c0_i32 = arith.constant 0 : i32
    %c0_i32_0 = arith.constant 0 : i32
    %c0_i32_1 = arith.constant 0 : i32
    return %c0_i32, %c0_i32_0 : i32, i32
  }
  func.func @transform_2(%arg0: i32, %arg1: i32) -> (i32, i32) {
    %c0_i32 = arith.constant 0 : i32
    %c0_i32_0 = arith.constant 0 : i32
    %c0_i32_1 = arith.constant 0 : i32
    return %c0_i32, %c0_i32_0 : i32, i32
  }
  func.func @transform_3(%arg0: i32, %arg1: i32) -> (i32, i32) {
    %c0_i32 = arith.constant 0 : i32
    %c0_i32_0 = arith.constant 0 : i32
    %c0_i32_1 = arith.constant 0 : i32
    return %c0_i32, %c0_i32_0 : i32, i32
  }
  func.func @transform_4(%arg0: i32, %arg1: i32) -> (i32, i32) {
    %c0_i32 = arith.constant 0 : i32
    %c0_i32_0 = arith.constant 0 : i32
    return %arg0, %c0_i32 : i32, i32
  }
}

</mosaic_0001>

<bundles_post_ra>
// kernel: tpu_custom_call.1
= control target key start
LH: loop header
LB: loop body
LE: loop exit
PB: predicated region body
PF: predicated region fallthrough
CT: control target
= control target key end

     0   :  { %9 = vsyncpa [#allocation6], 0  ;;  %s3859_s0 = inlined_call_operand.hbm [shape: f32[8,8,384], index: 0, kind: input, shape index: {}]   ;;  %s3860_s1 = inlined_call_operand.hbm [shape: f32[384,512], index: 1, kind: input, shape index: {}]   ;;  %s3861_s2 = inlined_call_operand.hbm [shape: f32[128,512], index: 2, kind: input, shape index: {}]   ;;  %s3862_s3 = inlined_call_operand.vmem [shape: f32[1,512], index: 3, kind: input, shape index: {}]   ;;  %s3863_s4 = inlined_call_operand.hbm [shape: f32[8,128], index: 4, kind: output, shape index: {}]  }
   0x1   :  { %10 = vsyncpa [#allocation9], 0 }
   0x2   :  { %11 = vsyncpa [#allocation7], 0  ;;  %s3350_s15 = smov [#allocation8]   ;;  %s3256_s19 = scalar_lea.hbm %s3860_s1, 24576 }
   0x3   :  { %s29_s16 = sshll.u32 %s3350_s15, 4  ;;  %p3257_p0 = scmp.ne.s32.totalorder %s3860_s1, %s3256_s19  ;;  %s30_s16 = int_to_ptr.vmem [resolvable:$true] %s29_s16 }
   0x4   :  { %p3260_p1 = scmp.lt.u32.totalorder %s3256_s19, %s3860_s1 }
   0x6   :  { %p3262_p2 = pnand %p3260_p1, %p3257_p0 }
   0x8   :  { %3265 = shalt.err (!%p3262_p2)
}
   0x9   :  { %s3266_s24 = scalar_lea.vmem %s30_s16, 24576  ;;  %p3271_p4 = scmp.lt.s32.totalorder %s30_s16, %s30_s16 }
   0xa   :  { %p3267_p3 = scmp.ne.s32.totalorder %s30_s16, %s3266_s24  ;;  %p3272_p5 = scmp.lt.s32.totalorder %s3266_s24, %s3266_s24 }
   0xc   :  { %p3273_p6 = por %p3272_p5, %p3271_p4 }
   0xe   :  { %p3274_p7 = pnand %p3273_p6, %p3267_p3 }
  0x10   :  { %3277 = shalt.err (!%p3274_p7)
}
  0x11   :  { %s3351_s25 = smov 512   ;;  %s3352_s26 = smov 32  }
  0x12   :  { %35 = dma.hbm_to_vmem [thread:$0]  %s3860_s1, 24576, %s30_s16, [#allocation9], %s3351_s25, %s3351_s25, %s3352_s26  }
  0x13   :  { %s3353_s29 = smov [#allocation5]   ;;  %s3278_s7 = scalar_lea.hbm %s3859_s0, 3072 }
  0x14   :  { %s17_s30 = sshll.u32 %s3353_s29, 4  ;;  %p3279_p8 = scmp.ne.s32.totalorder %s3859_s0, %s3278_s7  ;;  %s18_s30 = int_to_ptr.vmem [resolvable:$true] %s17_s30 }
  0x15   :  { %p3282_p9 = scmp.lt.u32.totalorder %s3278_s7, %s3859_s0 }
  0x17   :  { %p3284_p10 = pnand %p3282_p9, %p3279_p8 }
  0x19   :  { %3287 = shalt.err (!%p3284_p10)
}
  0x1a   :  { %s3288_s12 = scalar_lea.vmem %s18_s30, 3072  ;;  %p3293_p12 = scmp.lt.s32.totalorder %s18_s30, %s18_s30 }
  0x1b   :  { %p3289_p11 = scmp.ne.s32.totalorder %s18_s30, %s3288_s12  ;;  %p3294_p13 = scmp.lt.s32.totalorder %s3288_s12, %s3288_s12 }
  0x1d   :  { %p3295_p0 = por %p3294_p13, %p3293_p12 }
  0x1f   :  { %p3296_p1 = pnand %p3295_p0, %p3289_p11 }
  0x21   :  { %3299 = shalt.err (!%p3296_p1)
}
  0x22   :  { %s3354_s1 = smov 384   ;;  %s3355_s13 = smov 24  }
  0x23   :  { %23 = dma.hbm_to_vmem [thread:$0]  %s3859_s0, 3072, %s18_s30, [#allocation6], %s3354_s1, %s3354_s1, %s3355_s13  }
  0x24   :  { %s3356_s16 = smov [#allocation10]   ;;  %s3300_s20 = scalar_lea.hbm %s3861_s2, 8192 }
  0x25   :  { %s41_s17 = sshll.u32 %s3356_s16, 4  ;;  %p3301_p2 = scmp.ne.s32.totalorder %s3861_s2, %s3300_s20  ;;  %s42_s17 = int_to_ptr.vmem [resolvable:$true] %s41_s17 }
  0x26   :  { %p3304_p3 = scmp.lt.u32.totalorder %s3300_s20, %s3861_s2 }
  0x28   :  { %p3306_p4 = pnand %p3304_p3, %p3301_p2 }
  0x2a   :  { %3309 = shalt.err (!%p3306_p4)
}
  0x2b   :  { %s3310_s27 = scalar_lea.vmem %s42_s17, 8192  ;;  %p3315_p6 = scmp.lt.s32.totalorder %s42_s17, %s42_s17 }
  0x2c   :  { %p3311_p5 = scmp.ne.s32.totalorder %s42_s17, %s3310_s27  ;;  %p3316_p7 = scmp.lt.s32.totalorder %s3310_s27, %s3310_s27 }
  0x2e   :  { %p3317_p8 = por %p3316_p7, %p3315_p6 }
  0x30   :  { %p3318_p9 = pnand %p3317_p8, %p3311_p5 }
  0x32   :  { %3321 = shalt.err (!%p3318_p9)
}
  0x33   :  { %47 = dma.hbm_to_vmem [thread:$0]  %s3861_s2, 8192, %s42_s17, [#allocation9], %s3351_s25, %s3351_s25, %s3352_s26  }
  0x34   :  { %3344 = dma.done.wait [#allocation6], 3072  }
  0x35   :  { %3345 = vsyncadd [#allocation6], 4294964224 }
  0x36   :  { %3346 = dma.done.wait [#allocation9], 32768  }
  0x37   :  { %3347 = vsyncadd [#allocation9], 4294934528  ;;  %v90_v0 = vld [vmem:[#allocation8 + $0x8] sm:$0xff]  ;;  %v92_v2 = vld [vmem:[#allocation8 + $0x18] sm:$0xff] }
  0x38   :  { %v94_v1 = vld [vmem:[#allocation8 + $0x28] sm:$0xff]  ;;  %v96_v4 = vld [vmem:[#allocation8 + $0x38] sm:$0xff]  ;;  %v89_v5 = vld [vmem:[#allocation8] sm:$0xff] }
  0x39   :  { %v2319_v3 = vpack.c.bf16 %v94_v1, %v90_v0  ;;  %v93_v6 = vld [vmem:[#allocation8 + $0x20] sm:$0xff]  ;;  %v2415_v7 = vpack.c.bf16 %v96_v4, %v92_v2  ;;  %v91_v9 = vld [vmem:[#allocation8 + $0x10] sm:$0xff]  ;;  %v98_v11 = vld [vmem:[#allocation8 + $0x48] sm:$0xff] }
  0x3a   :  { %v2321_v8 = vpack.c.bf16 %v93_v6, %v89_v5  ;;  %v95_v10 = vld [vmem:[#allocation8 + $0x30] sm:$0xff]  ;;  %v102_v13 = vld [vmem:[#allocation8 + $0x68] sm:$0xff]  ;;  %v100_v14 = vld [vmem:[#allocation8 + $0x58] sm:$0xff] }
  0x3b   :  { %2320 = vmatprep.subr.bf16.mxu0 %v2319_v3  ;;  %v2417_v12 = vpack.c.bf16 %v95_v10, %v91_v9  ;;  %v104_v15 = vld [vmem:[#allocation8 + $0x78] sm:$0xff]  ;;  %2416 = vmatprep.subr.bf16.mxu1 %v2415_v7  ;;  %v2323_v16 = vpack.c.bf16 %v102_v13, %v98_v11  ;;  %v97_v18 = vld [vmem:[#allocation8 + $0x40] sm:$0xff]  ;;  %v99_v20 = vld [vmem:[#allocation8 + $0x50] sm:$0xff] }
  0x3c   :  { %2322 = vmatpush1.bf16.msra.mxu0 %v2321_v8  ;;  %v2419_v17 = vpack.c.bf16 %v104_v15, %v100_v14  ;;  %v101_v19 = vld [vmem:[#allocation8 + $0x60] sm:$0xff]  ;;  %v103_v22 = vld [vmem:[#allocation8 + $0x70] sm:$0xff]  ;;  %v106_v23 = vld [vmem:[#allocation8 + $0x88] sm:$0xff] }
  0x3d   :  { %2418 = vmatpush1.bf16.msra.mxu1 %v2417_v12  ;;  %v2325_v21 = vpack.c.bf16 %v101_v19, %v97_v18  ;;  %v110_v24 = vld [vmem:[#allocation8 + $0xa8] sm:$0xff]  ;;  %2324 = vmatprep.subr.bf16.mxu0 %v2323_v16  ;;  %v2421_v25 = vpack.c.bf16 %v103_v22, %v99_v20  ;;  %v108_v27 = vld [vmem:[#allocation8 + $0x98] sm:$0xff]  ;;  %v105_v29 = vld [vmem:[#allocation8 + $0x80] sm:$0xff] }
  0x3e   :  { %2420 = vmatprep.subr.bf16.mxu1 %v2419_v17  ;;  %v2327_v26 = vpack.c.bf16 %v110_v24, %v106_v23  ;;  %v112_v28 = vld [vmem:[#allocation8 + $0xb8] sm:$0xff]  ;;  %v109_v31 = vld [vmem:[#allocation8 + $0xa0] sm:$0xff]  ;;  %v107_v32 = vld [vmem:[#allocation8 + $0x90] sm:$0xff] }
  0x3f   :  { %v2423_v30 = vpack.c.bf16 %v112_v28, %v108_v27  ;;  %v111_v33 = vld [vmem:[#allocation8 + $0xb0] sm:$0xff]  ;;  %v2329_v34 = vpack.c.bf16 %v109_v31, %v105_v29  ;;  %v114_v35 = vld [vmem:[#allocation8 + $0xc8] sm:$0xff]  ;;  %v116_v37 = vld [vmem:[#allocation8 + $0xd8] sm:$0xff] }
  0x40   :  { %2326 = vmatpush1.bf16.msra.mxu0 %v2325_v21  ;;  %v118_v36 = vld [vmem:[#allocation8 + $0xe8] sm:$0xff]  ;;  %v2425_v38 = vpack.c.bf16 %v111_v33, %v107_v32  ;;  %v120_v40 = vld [vmem:[#allocation8 + $0xf8] sm:$0xff]  ;;  %v113_v41 = vld [vmem:[#allocation8 + $0xc0] sm:$0xff] }
  0x41   :  { %2422 = vmatpush1.bf16.msra.mxu1 %v2421_v25  ;;  %2328 = vmatprep.subr.bf16.mxu0 %v2327_v26  ;;  %v2331_v39 = vpack.c.bf16 %v118_v36, %v114_v35  ;;  %v117_v42 = vld [vmem:[#allocation8 + $0xe0] sm:$0xff]  ;;  %v2427_v43 = vpack.c.bf16 %v120_v40, %v116_v37  ;;  %v115_v44 = vld [vmem:[#allocation8 + $0xd0] sm:$0xff]  ;;  %v122_v46 = vld [vmem:[#allocation8 + $0x108] sm:$0xff] }
  0x42   :  { %2424 = vmatprep.subr.bf16.mxu1 %v2423_v30  ;;  %v119_v45 = vld [vmem:[#allocation8 + $0xf0] sm:$0xff]  ;;  %v126_v47 = vld [vmem:[#allocation8 + $0x128] sm:$0xff]  ;;  %v124_v48 = vld [vmem:[#allocation8 + $0x118] sm:$0xff]  ;;  %v2333_v50 = vpack.c.bf16 %v117_v42, %v113_v41 }
  0x43   :  { %v128_v49 = vld [vmem:[#allocation8 + $0x138] sm:$0xff]  ;;  %v2429_v51 = vpack.c.bf16 %v119_v45, %v115_v44  ;;  %v2335_v52 = vpack.c.bf16 %v126_v47, %v122_v46  ;;  %v121_v53 = vld [vmem:[#allocation8 + $0x100] sm:$0xff]  ;;  %v123_v55 = vld [vmem:[#allocation8 + $0x110] sm:$0xff] }
  0x44   :  { %2330 = vmatpush1.bf16.msra.mxu0 %v2329_v34  ;;  %v125_v54 = vld [vmem:[#allocation8 + $0x120] sm:$0xff]  ;;  %v2431_v56 = vpack.c.bf16 %v128_v49, %v124_v48  ;;  %v127_v57 = vld [vmem:[#allocation8 + $0x130] sm:$0xff]  ;;  %v130_v58 = vld [vmem:[#allocation8 + $0x148] sm:$0xff] }
  0x45   :  { %2426 = vmatpush1.bf16.msra.mxu1 %v2425_v38  ;;  %2332 = vmatprep.subr.bf16.mxu0 %v2331_v39  ;;  %v134_v59 = vld [vmem:[#allocation8 + $0x168] sm:$0xff]  ;;  %v132_v60 = vld [vmem:[#allocation8 + $0x158] sm:$0xff]  ;;  %v2337_v62 = vpack.c.bf16 %v125_v54, %v121_v53  ;;  %v2433_v63 = vpack.c.bf16 %v127_v57, %v123_v55  ;;  %v129_v1 = vld [vmem:[#allocation8 + $0x140] sm:$0xff] }
  0x46   :  { %2428 = vmatprep.subr.bf16.mxu1 %v2427_v43  ;;  %v136_v61 = vld [vmem:[#allocation8 + $0x178] sm:$0xff]  ;;  %v2339_v0 = vpack.c.bf16 %v134_v59, %v130_v58  ;;  %v133_v2 = vld [vmem:[#allocation8 + $0x160] sm:$0xff]  ;;  %v131_v3 = vld [vmem:[#allocation8 + $0x150] sm:$0xff] }
  0x47   :  { %v2435_v4 = vpack.c.bf16 %v136_v61, %v132_v60  ;;  %v135_v5 = vld [vmem:[#allocation8 + $0x170] sm:$0xff]  ;;  %v138_v6 = vld [vmem:[#allocation8 + $0x188] sm:$0xff]  ;;  %v140_v8 = vld [vmem:[#allocation8 + $0x198] sm:$0xff]  ;;  %v2341_v10 = vpack.c.bf16 %v133_v2, %v129_v1 }
  0x48   :  { %2334 = vmatpush1.bf16.msra.mxu0 %v2333_v50  ;;  %v142_v7 = vld [vmem:[#allocation8 + $0x1a8] sm:$0xff]  ;;  %v144_v9 = vld [vmem:[#allocation8 + $0x1b8] sm:$0xff]  ;;  %v2437_v11 = vpack.c.bf16 %v135_v5, %v131_v3  ;;  %v137_v13 = vld [vmem:[#allocation8 + $0x180] sm:$0xff] }
  0x49   :  { %2430 = vmatpush1.bf16.msra.mxu1 %v2429_v51  ;;  %2336 = vmatprep.subr.bf16.mxu0 %v2335_v52  ;;  %v2343_v12 = vpack.c.bf16 %v142_v7, %v138_v6  ;;  %v141_v14 = vld [vmem:[#allocation8 + $0x1a0] sm:$0xff]  ;;  %v139_v15 = vld [vmem:[#allocation8 + $0x190] sm:$0xff]  ;;  %v2439_v16 = vpack.c.bf16 %v144_v9, %v140_v8  ;;  %v146_v18 = vld [vmem:[#allocation8 + $0x1c8] sm:$0xff] }
  0x4a   :  { %2432 = vmatprep.subr.bf16.mxu1 %v2431_v56  ;;  %v143_v17 = vld [vmem:[#allocation8 + $0x1b0] sm:$0xff]  ;;  %v150_v19 = vld [vmem:[#allocation8 + $0x1e8] sm:$0xff]  ;;  %v148_v20 = vld [vmem:[#allocation8 + $0x1d8] sm:$0xff]  ;;  %v2345_v22 = vpack.c.bf16 %v141_v14, %v137_v13 }
  0x4b   :  { %v152_v21 = vld [vmem:[#allocation8 + $0x1f8] sm:$0xff]  ;;  %v2441_v23 = vpack.c.bf16 %v143_v17, %v139_v15  ;;  %v2347_v24 = vpack.c.bf16 %v150_v19, %v146_v18  ;;  %v145_v25 = vld [vmem:[#allocation8 + $0x1c0] sm:$0xff]  ;;  %v147_v27 = vld [vmem:[#allocation8 + $0x1d0] sm:$0xff] }
  0x4c   :  { %2338 = vmatpush1.bf16.msra.mxu0 %v2337_v62  ;;  %v149_v26 = vld [vmem:[#allocation8 + $0x1e0] sm:$0xff]  ;;  %v2443_v28 = vpack.c.bf16 %v152_v21, %v148_v20  ;;  %v151_v29 = vld [vmem:[#allocation8 + $0x1f0] sm:$0xff]  ;;  %v154_v30 = vld [vmem:[#allocation8 + $0x208] sm:$0xff] }
  0x4d   :  { %2434 = vmatpush1.bf16.msra.mxu1 %v2433_v63  ;;  %2340 = vmatprep.subr.bf16.mxu0 %v2339_v0  ;;  %v158_v31 = vld [vmem:[#allocation8 + $0x228] sm:$0xff]  ;;  %v156_v32 = vld [vmem:[#allocation8 + $0x218] sm:$0xff]  ;;  %v2349_v34 = vpack.c.bf16 %v149_v26, %v145_v25  ;;  %v2445_v35 = vpack.c.bf16 %v151_v29, %v147_v27  ;;  %v153_v37 = vld [vmem:[#allocation8 + $0x200] sm:$0xff] }
  0x4e   :  { %2436 = vmatprep.subr.bf16.mxu1 %v2435_v4  ;;  %v160_v33 = vld [vmem:[#allocation8 + $0x238] sm:$0xff]  ;;  %v2351_v36 = vpack.c.bf16 %v158_v31, %v154_v30  ;;  %v157_v38 = vld [vmem:[#allocation8 + $0x220] sm:$0xff]  ;;  %v155_v39 = vld [vmem:[#allocation8 + $0x210] sm:$0xff] }
  0x4f   :  { %v2447_v40 = vpack.c.bf16 %v160_v33, %v156_v32  ;;  %v159_v41 = vld [vmem:[#allocation8 + $0x230] sm:$0xff]  ;;  %v162_v42 = vld [vmem:[#allocation8 + $0x248] sm:$0xff]  ;;  %v164_v44 = vld [vmem:[#allocation8 + $0x258] sm:$0xff]  ;;  %v2353_v46 = vpack.c.bf16 %v157_v38, %v153_v37 }
  0x50   :  { %2342 = vmatpush1.bf16.msra.mxu0 %v2341_v10  ;;  %v166_v43 = vld [vmem:[#allocation8 + $0x268] sm:$0xff]  ;;  %v168_v45 = vld [vmem:[#allocation8 + $0x278] sm:$0xff]  ;;  %v2449_v47 = vpack.c.bf16 %v159_v41, %v155_v39  ;;  %v161_v49 = vld [vmem:[#allocation8 + $0x240] sm:$0xff] }
  0x51   :  { %2438 = vmatpush1.bf16.msra.mxu1 %v2437_v11  ;;  %2344 = vmatprep.subr.bf16.mxu0 %v2343_v12  ;;  %v2355_v48 = vpack.c.bf16 %v166_v43, %v162_v42  ;;  %v165_v50 = vld [vmem:[#allocation8 + $0x260] sm:$0xff]  ;;  %v163_v51 = vld [vmem:[#allocation8 + $0x250] sm:$0xff]  ;;  %v2451_v52 = vpack.c.bf16 %v168_v45, %v164_v44  ;;  %v170_v54 = vld [vmem:[#allocation8 + $0x288] sm:$0xff] }
  0x52   :  { %2440 = vmatprep.subr.bf16.mxu1 %v2439_v16  ;;  %v167_v53 = vld [vmem:[#allocation8 + $0x270] sm:$0xff]  ;;  %v174_v55 = vld [vmem:[#allocation8 + $0x2a8] sm:$0xff]  ;;  %v172_v56 = vld [vmem:[#allocation8 + $0x298] sm:$0xff]  ;;  %v2357_v58 = vpack.c.bf16 %v165_v50, %v161_v49 }
  0x53   :  { %v176_v57 = vld [vmem:[#allocation8 + $0x2b8] sm:$0xff]  ;;  %v2453_v59 = vpack.c.bf16 %v167_v53, %v163_v51  ;;  %v2359_v60 = vpack.c.bf16 %v174_v55, %v170_v54  ;;  %v169_v61 = vld [vmem:[#allocation8 + $0x280] sm:$0xff]  ;;  %v171_v63 = vld [vmem:[#allocation8 + $0x290] sm:$0xff] }
  0x54   :  { %2346 = vmatpush1.bf16.msra.mxu0 %v2345_v22  ;;  %v173_v62 = vld [vmem:[#allocation8 + $0x2a0] sm:$0xff]  ;;  %v2455_v0 = vpack.c.bf16 %v176_v57, %v172_v56  ;;  %v175_v1 = vld [vmem:[#allocation8 + $0x2b0] sm:$0xff]  ;;  %v178_v2 = vld [vmem:[#allocation8 + $0x2c8] sm:$0xff] }
  0x55   :  { %2442 = vmatpush1.bf16.msra.mxu1 %v2441_v23  ;;  %2348 = vmatprep.subr.bf16.mxu0 %v2347_v24  ;;  %v182_v3 = vld [vmem:[#allocation8 + $0x2e8] sm:$0xff]  ;;  %v180_v4 = vld [vmem:[#allocation8 + $0x2d8] sm:$0xff]  ;;  %v2361_v6 = vpack.c.bf16 %v173_v62, %v169_v61  ;;  %v177_v7 = vld [vmem:[#allocation8 + $0x2c0] sm:$0xff]  ;;  %v2457_v8 = vpack.c.bf16 %v175_v1, %v171_v63 }
  0x56   :  { %2444 = vmatprep.subr.bf16.mxu1 %v2443_v28  ;;  %v184_v5 = vld [vmem:[#allocation8 + $0x2f8] sm:$0xff]  ;;  %v2363_v9 = vpack.c.bf16 %v182_v3, %v178_v2  ;;  %v181_v10 = vld [vmem:[#allocation8 + $0x2e0] sm:$0xff]  ;;  %v179_v11 = vld [vmem:[#allocation8 + $0x2d0] sm:$0xff] }
  0x57   :  { %v183_v12 = vld [vmem:[#allocation8 + $0x2f0] sm:$0xff]  ;;  %v2459_v13 = vpack.c.bf16 %v184_v5, %v180_v4  ;;  %v186_v14 = vld [vmem:[#allocation8 + $0x308] sm:$0xff]  ;;  %v188_v17 = vld [vmem:[#allocation8 + $0x318] sm:$0xff]  ;;  %v2365_v19 = vpack.c.bf16 %v181_v10, %v177_v7 }
  0x58   :  { %2350 = vmatpush1.bf16.msra.mxu0 %v2349_v34  ;;  %v190_v15 = vld [vmem:[#allocation8 + $0x328] sm:$0xff]  ;;  %v192_v18 = vld [vmem:[#allocation8 + $0x338] sm:$0xff]  ;;  %v2461_v20 = vpack.c.bf16 %v183_v12, %v179_v11  ;;  %v185_v22 = vld [vmem:[#allocation8 + $0x300] sm:$0xff] }
  0x59   :  { %2446 = vmatpush1.bf16.msra.mxu1 %v2445_v35  ;;  %2352 = vmatprep.subr.bf16.mxu0 %v2351_v36  ;;  %v66_v16 = vld [vmem:[#allocation5 + $0x8] sm:$0xff]  ;;  %v2367_v21 = vpack.c.bf16 %v190_v15, %v186_v14  ;;  %v189_v23 = vld [vmem:[#allocation8 + $0x320] sm:$0xff]  ;;  %v187_v24 = vld [vmem:[#allocation8 + $0x310] sm:$0xff]  ;;  %v2463_v25 = vpack.c.bf16 %v192_v18, %v188_v17 }
  0x5a   :  { %2448 = vmatprep.subr.bf16.mxu1 %v2447_v40  ;;  %367 = vmatprep.mubr.f32.mxu0 %v66_v16  ;;  %v191_v26 = vld [vmem:[#allocation8 + $0x330] sm:$0xff]  ;;  %v194_v27 = vld [vmem:[#allocation8 + $0x348] sm:$0xff]  ;;  %v196_v29 = vld [vmem:[#allocation8 + $0x358] sm:$0xff]  ;;  %v2369_v31 = vpack.c.bf16 %v189_v23, %v185_v22 }
  0x5b   :  { %593 = vmatprep.mubr.f32.mxu1 %v66_v16  ;;  %v198_v28 = vld [vmem:[#allocation8 + $0x368] sm:$0xff]  ;;  %v200_v30 = vld [vmem:[#allocation8 + $0x378] sm:$0xff]  ;;  %v2465_v32 = vpack.c.bf16 %v191_v26, %v187_v24  ;;  %v193_v34 = vld [vmem:[#allocation8 + $0x340] sm:$0xff] }
  0x5c   :  { %2354 = vmatpush1.bf16.msra.mxu0 %v2353_v46  ;;  %v2371_v33 = vpack.c.bf16 %v198_v28, %v194_v27  ;;  %v197_v35 = vld [vmem:[#allocation8 + $0x360] sm:$0xff]  ;;  %v195_v36 = vld [vmem:[#allocation8 + $0x350] sm:$0xff]  ;;  %v2467_v37 = vpack.c.bf16 %v200_v30, %v196_v29  ;;  %v202_v39 = vld [vmem:[#allocation8 + $0x388] sm:$0xff] }
  0x5d   :  { %2450 = vmatpush1.bf16.msra.mxu1 %v2449_v47  ;;  %2356 = vmatprep.subr.bf16.mxu0 %v2355_v48  ;;  %v199_v38 = vld [vmem:[#allocation8 + $0x370] sm:$0xff]  ;;  %v206_v40 = vld [vmem:[#allocation8 + $0x3a8] sm:$0xff]  ;;  %v204_v41 = vld [vmem:[#allocation8 + $0x398] sm:$0xff]  ;;  %v2373_v43 = vpack.c.bf16 %v197_v35, %v193_v34 }
  0x5e   :  { %2452 = vmatprep.subr.bf16.mxu1 %v2451_v52  ;;  %v208_v42 = vld [vmem:[#allocation8 + $0x3b8] sm:$0xff]  ;;  %v2469_v44 = vpack.c.bf16 %v199_v38, %v195_v36  ;;  %v2375_v45 = vpack.c.bf16 %v206_v40, %v202_v39  ;;  %v201_v46 = vld [vmem:[#allocation8 + $0x380] sm:$0xff]  ;;  %v203_v48 = vld [vmem:[#allocation8 + $0x390] sm:$0xff] }
  0x5f   :  { %v205_v47 = vld [vmem:[#allocation8 + $0x3a0] sm:$0xff]  ;;  %v2471_v49 = vpack.c.bf16 %v208_v42, %v204_v41  ;;  %v207_v50 = vld [vmem:[#allocation8 + $0x3b0] sm:$0xff]  ;;  %v210_v51 = vld [vmem:[#allocation8 + $0x3c8] sm:$0xff] }
  0x60   :  { %2358 = vmatpush1.bf16.msra.mxu0 %v2357_v58  ;;  %v214_v52 = vld [vmem:[#allocation8 + $0x3e8] sm:$0xff]  ;;  %v212_v53 = vld [vmem:[#allocation8 + $0x3d8] sm:$0xff]  ;;  %v2377_v55 = vpack.c.bf16 %v205_v47, %v201_v46  ;;  %v2473_v56 = vpack.c.bf16 %v207_v50, %v203_v48  ;;  %v209_v58 = vld [vmem:[#allocation8 + $0x3c0] sm:$0xff] }
  0x61   :  { %2454 = vmatpush1.bf16.msra.mxu1 %v2453_v59  ;;  %2360 = vmatprep.subr.bf16.mxu0 %v2359_v60  ;;  %v216_v54 = vld [vmem:[#allocation8 + $0x3f8] sm:$0xff]  ;;  %v2379_v57 = vpack.c.bf16 %v214_v52, %v210_v51  ;;  %v213_v59 = vld [vmem:[#allocation8 + $0x3e0] sm:$0xff]  ;;  %v211_v60 = vld [vmem:[#allocation8 + $0x3d0] sm:$0xff] }
  0x62   :  { %2456 = vmatprep.subr.bf16.mxu1 %v2455_v0  ;;  %v2475_v61 = vpack.c.bf16 %v216_v54, %v212_v53  ;;  %v215_v62 = vld [vmem:[#allocation8 + $0x3f0] sm:$0xff]  ;;  %v218_v63 = vld [vmem:[#allocation8 + $0x408] sm:$0xff]  ;;  %v220_v1 = vld [vmem:[#allocation8 + $0x418] sm:$0xff]  ;;  %v2381_v3 = vpack.c.bf16 %v213_v59, %v209_v58 }
  0x63   :  { %v222_v0 = vld [vmem:[#allocation8 + $0x428] sm:$0xff]  ;;  %v224_v2 = vld [vmem:[#allocation8 + $0x438] sm:$0xff]  ;;  %v2477_v4 = vpack.c.bf16 %v215_v62, %v211_v60  ;;  %v221_v7 = vld [vmem:[#allocation8 + $0x420] sm:$0xff] }
  0x64   :  { %2362 = vmatpush1.bf16.msra.mxu0 %v2361_v6  ;;  %v2383_v5 = vpack.c.bf16 %v222_v0, %v218_v63  ;;  %v217_v6 = vld [vmem:[#allocation8 + $0x400] sm:$0xff]  ;;  %v223_v10 = vld [vmem:[#allocation8 + $0x430] sm:$0xff]  ;;  %v226_v11 = vld [vmem:[#allocation8 + $0x448] sm:$0xff] }
  0x65   :  { %2458 = vmatpush1.bf16.msra.mxu1 %v2457_v8  ;;  %2364 = vmatprep.subr.bf16.mxu0 %v2363_v9  ;;  %v2479_v8 = vpack.c.bf16 %v224_v2, %v220_v1  ;;  %v219_v9 = vld [vmem:[#allocation8 + $0x410] sm:$0xff]  ;;  %v230_v12 = vld [vmem:[#allocation8 + $0x468] sm:$0xff]  ;;  %v2385_v14 = vpack.c.bf16 %v221_v7, %v217_v6  ;;  %v228_v15 = vld [vmem:[#allocation8 + $0x458] sm:$0xff] }
  0x66   :  { %2460 = vmatprep.subr.bf16.mxu1 %v2459_v13  ;;  %v65_v13 = vld [vmem:[#allocation5] sm:$0xff]  ;;  %v232_v16 = vld [vmem:[#allocation8 + $0x478] sm:$0xff]  ;;  %v2481_v17 = vpack.c.bf16 %v223_v10, %v219_v9  ;;  %v227_v22 = vld [vmem:[#allocation8 + $0x450] sm:$0xff] }
  0x67   :  { %v225_v18 = vld [vmem:[#allocation8 + $0x440] sm:$0xff]  ;;  %v231_v23 = vld [vmem:[#allocation8 + $0x470] sm:$0xff]  ;;  %v2483_v24 = vpack.c.bf16 %v232_v16, %v228_v15  ;;  %v238_v26 = vld [vmem:[#allocation8 + $0x4a8] sm:$0xff] }
  0x68   :  { %2366 = vmatpush1.bf16.msra.mxu0 %v2365_v19  ;;  %v229_v19 = vld [vmem:[#allocation8 + $0x460] sm:$0xff]  ;;  %v68_v27 = vld [vmem:[#allocation5 + $0x18] sm:$0xff]  ;;  %v235_v36 = vld [vmem:[#allocation8 + $0x490] sm:$0xff] }
  0x69   :  { %2462 = vmatpush1.bf16.msra.mxu1 %v2461_v20  ;;  %2368 = vmatprep.subr.bf16.mxu0 %v2367_v21  ;;  %v69_v20 = vld [vmem:[#allocation5 + $0x20] sm:$0xff]  ;;  %v2387_v21 = vpack.c.bf16 %v230_v12, %v226_v11  ;;  %v2389_v28 = vpack.c.bf16 %v229_v19, %v225_v18  ;;  %v236_v29 = vld [vmem:[#allocation8 + $0x498] sm:$0xff]  ;;  %v242_v39 = vld [vmem:[#allocation8 + $0x4c8] sm:$0xff] }
  0x6a   :  { %2464 = vmatprep.subr.bf16.mxu1 %v2463_v25  ;;  %v234_v25 = vld [vmem:[#allocation8 + $0x488] sm:$0xff]  ;;  %v240_v30 = vld [vmem:[#allocation8 + $0x4b8] sm:$0xff]  ;;  %v71_v41 = vld [vmem:[#allocation5 + $0x30] sm:$0xff] }
  0x6b   :  { %v72_v34 = vld [vmem:[#allocation5 + $0x38] sm:$0xff]  ;;  %v2391_v35 = vpack.c.bf16 %v238_v26, %v234_v25  ;;  %v2487_v38 = vpack.c.bf16 %v240_v30, %v236_v29  ;;  %v246_v40 = vld [vmem:[#allocation8 + $0x4e8] sm:$0xff]  ;;  %v241_v46 = vld [vmem:[#allocation8 + $0x4c0] sm:$0xff] }
  0x6c   :  { %2370 = vmatpush1.bf16.msra.mxu0 %v2369_v31  ;;  %v2485_v31 = vpack.c.bf16 %v231_v23, %v227_v22  ;;  %v245_v47 = vld [vmem:[#allocation8 + $0x4e0] sm:$0xff]  ;;  %v75_v48 = vld [vmem:[#allocation5 + $0x50] sm:$0xff]  ;;  %v250_v53 = vld [vmem:[#allocation8 + $0x508] sm:$0xff] }
  0x6d   :  { %2466 = vmatpush1.bf16.msra.mxu1 %v2465_v32  ;;  %2372 = vmatprep.subr.bf16.mxu0 %v2371_v33  ;;  %v233_v32 = vld [vmem:[#allocation8 + $0x480] sm:$0xff]  ;;  %v243_v50 = vld [vmem:[#allocation8 + $0x4d0] sm:$0xff]  ;;  %v254_v54 = vld [vmem:[#allocation8 + $0x528] sm:$0xff] }
  0x6e   :  { %2468 = vmatprep.subr.bf16.mxu1 %v2467_v37  ;;  %v237_v33 = vld [vmem:[#allocation8 + $0x4a0] sm:$0xff]  ;;  %v239_v37 = vld [vmem:[#allocation8 + $0x4b0] sm:$0xff]  ;;  %v256_v58 = vld [vmem:[#allocation8 + $0x538] sm:$0xff]  ;;  %v2399_v63 = vpack.c.bf16 %v254_v54, %v250_v53 }
  0x6f   :  { %v2393_v42 = vpack.c.bf16 %v237_v33, %v233_v32  ;;  %v247_v51 = vld [vmem:[#allocation8 + $0x4f0] sm:$0xff]  ;;  %v249_v60 = vld [vmem:[#allocation8 + $0x500] sm:$0xff]  ;;  %v78_v62 = vld [vmem:[#allocation5 + $0x68] sm:$0xff] }
  0x70   :  { %2374 = vmatpush1.bf16.msra.mxu0 %v2373_v43  ;;  %v244_v43 = vld [vmem:[#allocation8 + $0x4d8] sm:$0xff]  ;;  %v2493_v59 = vpack.c.bf16 %v247_v51, %v243_v50  ;;  %v251_v0 = vld [vmem:[#allocation8 + $0x510] sm:$0xff]  ;;  %v257_v10 = vld [vmem:[#allocation8 + $0x540] sm:$0xff] }
  0x71   :  { %2470 = vmatpush1.bf16.msra.mxu1 %v2469_v44  ;;  %2376 = vmatprep.subr.bf16.mxu0 %v2375_v45  ;;  %v248_v44 = vld [vmem:[#allocation8 + $0x4f8] sm:$0xff]  ;;  %v2489_v45 = vpack.c.bf16 %v239_v37, %v235_v36  ;;  %v255_v1 = vld [vmem:[#allocation8 + $0x530] sm:$0xff]  ;;  %v261_v11 = vld [vmem:[#allocation8 + $0x560] sm:$0xff] }
  0x72   :  { %2472 = vmatprep.subr.bf16.mxu1 %v2471_v49  ;;  %v2395_v49 = vpack.c.bf16 %v246_v40, %v242_v39  ;;  %v2491_v52 = vpack.c.bf16 %v248_v44, %v244_v43  ;;  %v260_v7 = vld [vmem:[#allocation8 + $0x558] sm:$0xff]  ;;  %v2497_v9 = vpack.c.bf16 %v255_v1, %v251_v0  ;;  %v81_v12 = vld [vmem:[#allocation5 + $0x80] sm:$0xff]  ;;  %v263_v15 = vld [vmem:[#allocation8 + $0x570] sm:$0xff]  ;;  %v3357_v0 = vmov 0.0  }
  0x73   :  { %v270_v18 = vld [vmem:[#allocation8 + $0x5a8] sm:$0xff]  ;;  %v80_v19 = vld [vmem:[#allocation5 + $0x78] sm:$0xff]  ;;  %v269_v25 = vld [vmem:[#allocation8 + $0x5a0] sm:$0xff] }
  0x74   :  { %2378 = vmatpush1.bf16.msra.mxu0 %v2377_v55  ;;  %v74_v55 = vld [vmem:[#allocation5 + $0x48] sm:$0xff]  ;;  %v272_v22 = vld [vmem:[#allocation8 + $0x5b8] sm:$0xff]  ;;  %v271_v29 = vld [vmem:[#allocation8 + $0x5b0] sm:$0xff] }
  0x75   :  { %2474 = vmatpush1.bf16.msra.mxu1 %v2473_v56  ;;  %2380 = vmatprep.subr.bf16.mxu0 %v2379_v57  ;;  %v2397_v56 = vpack.c.bf16 %v245_v47, %v241_v46  ;;  %v252_v57 = vld [vmem:[#allocation8 + $0x518] sm:$0xff]  ;;  %v278_v32 = vld [vmem:[#allocation8 + $0x5e8] sm:$0xff]  ;;  %v83_v33 = vld [vmem:[#allocation5 + $0x90] sm:$0xff] }
  0x76   :  { %2476 = vmatprep.subr.bf16.mxu1 %v2475_v61  ;;  %v253_v61 = vld [vmem:[#allocation8 + $0x520] sm:$0xff]  ;;  %v2495_v2 = vpack.c.bf16 %v256_v58, %v252_v57  ;;  %v84_v26 = vld [vmem:[#allocation5 + $0x98] sm:$0xff]  ;;  %v87_v40 = vld [vmem:[#allocation5 + $0xb0] sm:$0xff] }
  0x77   :  { %v2401_v6 = vpack.c.bf16 %v253_v61, %v249_v60  ;;  %v280_v36 = vld [vmem:[#allocation8 + $0x5f8] sm:$0xff]  ;;  %v277_v39 = vld [vmem:[#allocation8 + $0x5e0] sm:$0xff]  ;;  %v279_v43 = vld [vmem:[#allocation8 + $0x5f0] sm:$0xff] }
  0x78   :  { %2382 = vmatpush1.bf16.msra.mxu0 %v2381_v3  ;;  %v258_v3 = vld [vmem:[#allocation8 + $0x548] sm:$0xff]  ;;  %v794_v50 = vld [vmem:[#allocation10 + $0x38] sm:$0xff]  ;;  %v791_v53 = vld [vmem:[#allocation10 + $0x20] sm:$0xff] }
  0x79   :  { %2478 = vmatpush1.bf16.msra.mxu1 %v2477_v4  ;;  %2384 = vmatprep.subr.bf16.mxu0 %v2383_v5  ;;  %v262_v4 = vld [vmem:[#allocation8 + $0x568] sm:$0xff]  ;;  %v77_v5 = vld [vmem:[#allocation5 + $0x60] sm:$0xff]  ;;  %v67_v60 = vld [vmem:[#allocation5 + $0x10] sm:$0xff] }
  0x7a   :  { %2480 = vmatprep.subr.bf16.mxu1 %v2479_v8  ;;  %v264_v8 = vld [vmem:[#allocation8 + $0x578] sm:$0xff]  ;;  %v792_v46 = vld [vmem:[#allocation10 + $0x28] sm:$0xff] }
  0x7b   :  { %368 = vmatmul.mubr.f32.vlgmr.msra.gmra.mrb[0].mxu0 %v65_v13  ;;  %v2499_v16 = vpack.c.bf16 %v264_v8, %v260_v7  ;;  %v86_v47 = vld [vmem:[#allocation5 + $0xa8] sm:$0xff] }
  0x7c   :  { %594 = vmatmul.mubr.f32.vlgmr.msra.gmra.mrb[0].mxu1 %v65_v13  ;;  %2386 = vmatpush1.bf16.msra.mxu0 %v2385_v14  ;;  %v2403_v13 = vpack.c.bf16 %v262_v4, %v258_v3  ;;  %v259_v14 = vld [vmem:[#allocation8 + $0x550] sm:$0xff]  ;;  %v796_v58 = vld [vmem:[#allocation10 + $0x48] sm:$0xff]  ;;  %v799_v3 = vld [vmem:[#allocation10 + $0x60] sm:$0xff] }
  0x7d   :  { %2482 = vmatpush1.bf16.msra.mxu1 %v2481_v17  ;;  %373 = vmatprep.mubr.f32.mxu0 %v69_v20  ;;  %v266_v17 = vld [vmem:[#allocation8 + $0x588] sm:$0xff]  ;;  %v2501_v23 = vpack.c.bf16 %v263_v15, %v259_v14  ;;  %v803_v15 = vld [vmem:[#allocation10 + $0x80] sm:$0xff] }
  0x7e   :  { %599 = vmatprep.mubr.f32.mxu1 %v69_v20  ;;  %2388 = vmatprep.subr.bf16.mxu0 %v2387_v21  ;;  %v2405_v20 = vpack.c.bf16 %v261_v11, %v257_v10  ;;  %v268_v21 = vld [vmem:[#allocation8 + $0x598] sm:$0xff]  ;;  %v804_v8 = vld [vmem:[#allocation10 + $0x88] sm:$0xff] }
  0x7f   :  { %374 = vmatmul.mubr.f32.gmra.mrb[2].mxu0 %v68_v27  ;;  %2484 = vmatprep.subr.bf16.mxu1 %v2483_v24  ;;  %v265_v24 = vld [vmem:[#allocation8 + $0x580] sm:$0xff]  ;;  %v2503_v30 = vpack.c.bf16 %v272_v22, %v268_v21  ;;  %v70_v10 = vld [vmem:[#allocation5 + $0x28] sm:$0xff] }
  0x80   :  { %600 = vmatmul.mubr.f32.gmra.mrb[2].mxu1 %v68_v27  ;;  %2390 = vmatpush1.bf16.msra.mxu0 %v2389_v28  ;;  %v2407_v27 = vpack.c.bf16 %v270_v18, %v266_v17  ;;  %v267_v28 = vld [vmem:[#allocation8 + $0x590] sm:$0xff]  ;;  %v812_v21 = vld [vmem:[#allocation10 + $0xc8] sm:$0xff] }
  0x81   :  { %2486 = vmatpush1.bf16.msra.mxu1 %v2485_v31  ;;  %379 = vmatprep.mubr.f32.mxu0 %v72_v34  ;;  %v274_v31 = vld [vmem:[#allocation8 + $0x5c8] sm:$0xff]  ;;  %v2505_v37 = vpack.c.bf16 %v271_v29, %v267_v28  ;;  %v805_v18 = vld [vmem:[#allocation10 + $0x90] sm:$0xff]  ;;  %v811_v28 = vld [vmem:[#allocation10 + $0xc0] sm:$0xff] }
  0x82   :  { %605 = vmatprep.mubr.f32.mxu1 %v72_v34  ;;  %2392 = vmatprep.subr.bf16.mxu0 %v2391_v35  ;;  %v2409_v34 = vpack.c.bf16 %v269_v25, %v265_v24  ;;  %v276_v35 = vld [vmem:[#allocation8 + $0x5d8] sm:$0xff]  ;;  %v816_v22 = vld [vmem:[#allocation10 + $0xe8] sm:$0xff]  ;;  %v815_v29 = vld [vmem:[#allocation10 + $0xe0] sm:$0xff] }
  0x83   :  { %380 = vmatmul.mubr.f32.gmra.mrb[4].mxu0 %v71_v41  ;;  %2488 = vmatprep.subr.bf16.mxu1 %v2487_v38  ;;  %v273_v38 = vld [vmem:[#allocation8 + $0x5c0] sm:$0xff]  ;;  %v2507_v44 = vpack.c.bf16 %v280_v36, %v276_v35  ;;  %v814_v25 = vld [vmem:[#allocation10 + $0xd8] sm:$0xff]  ;;  %v824_v35 = vld [vmem:[#allocation10 + $0x128] sm:$0xff] }
  0x84   :  { %606 = vmatmul.mubr.f32.gmra.mrb[4].mxu1 %v71_v41  ;;  %2394 = vmatpush1.bf16.msra.mxu0 %v2393_v42  ;;  %v2411_v41 = vpack.c.bf16 %v278_v32, %v274_v31  ;;  %v275_v42 = vld [vmem:[#allocation8 + $0x5d0] sm:$0xff]  ;;  %v76_v36 = vld [vmem:[#allocation5 + $0x58] sm:$0xff] }
  0x85   :  { %2490 = vmatpush1.bf16.msra.mxu1 %v2489_v45  ;;  %385 = vmatprep.mubr.f32.mxu0 %v75_v48  ;;  %v788_v45 = vld [vmem:[#allocation10 + $0x8] sm:$0xff]  ;;  %v2509_v51 = vpack.c.bf16 %v279_v43, %v275_v42  ;;  %v813_v31 = vld [vmem:[#allocation10 + $0xd0] sm:$0xff]  ;;  %v823_v42 = vld [vmem:[#allocation10 + $0x120] sm:$0xff] }
  0x86   :  { %611 = vmatprep.mubr.f32.mxu1 %v75_v48  ;;  %2396 = vmatprep.subr.bf16.mxu0 %v2395_v49  ;;  %v2413_v48 = vpack.c.bf16 %v277_v39, %v273_v38  ;;  %v790_v49 = vld [vmem:[#allocation10 + $0x18] sm:$0xff]  ;;  %v3426_v54 = vpack.c.bf16 %v792_v46, %v788_v45  ;;  %v817_v32 = vld [vmem:[#allocation10 + $0xf0] sm:$0xff] }
  0x87   :  { %386 = vmatmul.mubr.f32.gmra.mrb[6].mxu0 %v74_v55  ;;  %2492 = vmatprep.subr.bf16.mxu1 %v2491_v52  ;;  %v787_v52 = vld [vmem:[#allocation10] sm:$0xff]  ;;  %v3428_v57 = vpack.c.bf16 %v794_v50, %v790_v49  ;;  %v822_v38 = vld [vmem:[#allocation10 + $0x118] sm:$0xff]  ;;  %v825_v45 = vld [vmem:[#allocation10 + $0x130] sm:$0xff] }
  0x88   :  { %612 = vmatmul.mubr.f32.gmra.mrb[6].mxu1 %v74_v55  ;;  %2398 = vmatpush1.bf16.msra.mxu0 %v2397_v56  ;;  %v789_v55 = vld [vmem:[#allocation10 + $0x10] sm:$0xff]  ;;  %v3430_v61 = vpack.c.bf16 %v791_v53, %v787_v52  ;;  %v826_v39 = vld [vmem:[#allocation10 + $0x138] sm:$0xff] }
  0x89   :  { %2494 = vmatpush1.bf16.msra.mxu1 %v2493_v59  ;;  %391 = vmatprep.mubr.f32.mxu0 %v78_v62  ;;  %v793_v56 = vld [vmem:[#allocation10 + $0x30] sm:$0xff]  ;;  %v800_v59 = vld [vmem:[#allocation10 + $0x68] sm:$0xff]  ;;  %v3482_v46 = vpack.c.bf16 %v826_v39, %v822_v38  ;;  %v834_v52 = vld [vmem:[#allocation10 + $0x178] sm:$0xff] }
  0x8a   :  { %617 = vmatprep.mubr.f32.mxu1 %v78_v62  ;;  %2400 = vmatprep.subr.bf16.mxu0 %v2399_v63  ;;  %v798_v62 = vld [vmem:[#allocation10 + $0x58] sm:$0xff]  ;;  %v3433_v1 = vpack.c.bf16 %v793_v56, %v789_v55  ;;  %v3437_v4 = vpack.c.bf16 %v800_v59, %v796_v58  ;;  %v79_v49 = vld [vmem:[#allocation5 + $0x70] sm:$0xff]  ;;  %v827_v55 = vld [vmem:[#allocation10 + $0x140] sm:$0xff] }
  0x8b   :  { %392 = vmatmul.mubr.f32.gmra.mrb[8].mxu0 %v77_v5  ;;  %2496 = vmatprep.subr.bf16.mxu1 %v2495_v2  ;;  %v802_v63 = vld [vmem:[#allocation10 + $0x78] sm:$0xff]  ;;  %v795_v2 = vld [vmem:[#allocation10 + $0x40] sm:$0xff]  ;;  %v829_v59 = vld [vmem:[#allocation10 + $0x150] sm:$0xff] }
  0x8c   :  { %618 = vmatmul.mubr.f32.gmra.mrb[8].mxu1 %v77_v5  ;;  %2402 = vmatpush1.bf16.msra.mxu0 %v2401_v6  ;;  %v797_v5 = vld [vmem:[#allocation10 + $0x50] sm:$0xff]  ;;  %v3440_v7 = vpack.c.bf16 %v802_v63, %v798_v62  ;;  %v3443_v11 = vpack.c.bf16 %v799_v3, %v795_v2  ;;  %v831_v56 = vld [vmem:[#allocation10 + $0x160] sm:$0xff]  ;;  %v836_v63 = vld [vmem:[#allocation10 + $0x188] sm:$0xff] }
  0x8d   :  { %2498 = vmatpush1.bf16.msra.mxu1 %v2497_v9  ;;  %397 = vmatprep.mubr.f32.mxu0 %v81_v12  ;;  %v801_v6 = vld [vmem:[#allocation10 + $0x70] sm:$0xff]  ;;  %v808_v9 = vld [vmem:[#allocation10 + $0xa8] sm:$0xff]  ;;  %v88_v38 = vld [vmem:[#allocation5 + $0xb8] sm:$0xff] }
  0x8e   :  { %623 = vmatprep.mubr.f32.mxu1 %v81_v12  ;;  %2404 = vmatprep.subr.bf16.mxu0 %v2403_v13  ;;  %v806_v12 = vld [vmem:[#allocation10 + $0x98] sm:$0xff]  ;;  %v3447_v14 = vpack.c.bf16 %v801_v6, %v797_v5  ;;  %v3451_v17 = vpack.c.bf16 %v808_v9, %v804_v8  ;;  %v840_v2 = vld [vmem:[#allocation10 + $0x1a8] sm:$0xff]  ;;  %v3499_v5 = vpack.c.bf16 %v831_v56, %v827_v55 }
  0x8f   :  { %398 = vmatmul.mubr.f32.gmra.mrb[10].mxu0 %v80_v19  ;;  %2500 = vmatprep.subr.bf16.mxu1 %v2499_v16  ;;  %v810_v13 = vld [vmem:[#allocation10 + $0xb8] sm:$0xff]  ;;  %v807_v16 = vld [vmem:[#allocation10 + $0xa0] sm:$0xff]  ;;  %v82_v3 = vld [vmem:[#allocation5 + $0x88] sm:$0xff] }
  0x90   :  { %624 = vmatmul.mubr.f32.gmra.mrb[10].mxu1 %v80_v19  ;;  %2406 = vmatpush1.bf16.msra.mxu0 %v2405_v20  ;;  %v809_v19 = vld [vmem:[#allocation10 + $0xb0] sm:$0xff]  ;;  %v3454_v20 = vpack.c.bf16 %v810_v13, %v806_v12  ;;  %v3457_v24 = vpack.c.bf16 %v807_v16, %v803_v15  ;;  %v838_v6 = vld [vmem:[#allocation10 + $0x198] sm:$0xff]  ;;  %v839_v12 = vld [vmem:[#allocation10 + $0x1a0] sm:$0xff]  ;;  %v3507_v13 = vpack.c.bf16 %v840_v2, %v836_v63 }
  0x91   :  { %2502 = vmatpush1.bf16.msra.mxu1 %v2501_v23  ;;  %403 = vmatprep.mubr.f32.mxu0 %v84_v26  ;;  %v73_v23 = vld [vmem:[#allocation5 + $0x40] sm:$0xff]  ;;  %v842_v8 = vld [vmem:[#allocation10 + $0x1b8] sm:$0xff]  ;;  %v837_v15 = vld [vmem:[#allocation10 + $0x190] sm:$0xff] }
  0x92   :  { %629 = vmatprep.mubr.f32.mxu1 %v84_v26  ;;  %2408 = vmatprep.subr.bf16.mxu0 %v2407_v27  ;;  %v818_v26 = vld [vmem:[#allocation10 + $0xf8] sm:$0xff]  ;;  %v3461_v27 = vpack.c.bf16 %v809_v19, %v805_v18  ;;  %v841_v16 = vld [vmem:[#allocation10 + $0x1b0] sm:$0xff]  ;;  %v3510_v18 = vpack.c.bf16 %v842_v8, %v838_v6  ;;  %v844_v19 = vld [vmem:[#allocation10 + $0x1c8] sm:$0xff] }
  0x93   :  { %404 = vmatmul.mubr.f32.gmra.mrb[12].mxu0 %v83_v33  ;;  %2504 = vmatprep.subr.bf16.mxu1 %v2503_v30  ;;  %v3465_v30 = vpack.c.bf16 %v816_v22, %v812_v21  ;;  %v848_v21 = vld [vmem:[#allocation10 + $0x1e8] sm:$0xff]  ;;  %v85_v22 = vld [vmem:[#allocation5 + $0xa0] sm:$0xff] }
  0x94   :  { %630 = vmatmul.mubr.f32.gmra.mrb[12].mxu1 %v83_v33  ;;  %2410 = vmatpush1.bf16.msra.mxu0 %v2409_v34  ;;  %v3468_v33 = vpack.c.bf16 %v818_v26, %v814_v25  ;;  %v820_v34 = vld [vmem:[#allocation10 + $0x108] sm:$0xff]  ;;  %v846_v25 = vld [vmem:[#allocation10 + $0x1d8] sm:$0xff] }
  0x95   :  { %2506 = vmatpush1.bf16.msra.mxu1 %v2505_v37  ;;  %409 = vmatprep.mubr.f32.mxu0 %v87_v40  ;;  %v3471_v37 = vpack.c.bf16 %v815_v29, %v811_v28  ;;  %v3479_v43 = vpack.c.bf16 %v824_v35, %v820_v34  ;;  %v850_v26 = vld [vmem:[#allocation10 + $0x1f8] sm:$0xff]  ;;  %v3517_v28 = vpack.c.bf16 %v841_v16, %v837_v15  ;;  %v843_v29 = vld [vmem:[#allocation10 + $0x1c0] sm:$0xff]  ;;  %v845_v34 = vld [vmem:[#allocation10 + $0x1d0] sm:$0xff] }
  0x96   :  { %635 = vmatprep.mubr.f32.mxu1 %v87_v40  ;;  %2412 = vmatprep.subr.bf16.mxu0 %v2411_v41  ;;  %v3475_v40 = vpack.c.bf16 %v817_v32, %v813_v31  ;;  %v819_v41 = vld [vmem:[#allocation10 + $0x100] sm:$0xff]  ;;  %v3521_v32 = vpack.c.bf16 %v848_v21, %v844_v19  ;;  %v849_v35 = vld [vmem:[#allocation10 + $0x1f0] sm:$0xff] }
  0x97   :  { %410 = vmatmul.mubr.f32.gmra.mrb[14].mxu0 %v86_v47  ;;  %2508 = vmatprep.subr.bf16.mxu1 %v2507_v44  ;;  %v821_v44 = vld [vmem:[#allocation10 + $0x110] sm:$0xff]  ;;  %v3485_v50 = vpack.c.bf16 %v823_v42, %v819_v41  ;;  %v847_v31 = vld [vmem:[#allocation10 + $0x1e0] sm:$0xff]  ;;  %v3531_v41 = vpack.c.bf16 %v849_v35, %v845_v34  ;;  %v283_v42 = vlaneseq }
  0x98   :  { %636 = vmatmul.mubr.f32.gmra.mrb[14].mxu1 %v86_v47  ;;  %2414 = vmatpush1.bf16.msra.mxu0 %v2413_v48  ;;  %v828_v47 = vld [vmem:[#allocation10 + $0x148] sm:$0xff]  ;;  %v3489_v53 = vpack.c.bf16 %v825_v45, %v821_v44  ;;  %v3527_v39 = vpack.c.bf16 %v847_v31, %v843_v29 }
  0x99   :  { %2510 = vmatpush1.bf16.msra.mxu1 %v2509_v51  ;;  %480 = vmatprep.mubr.f32.mxu0 %v3357_v0  ;;  %v832_v48 = vld [vmem:[#allocation10 + $0x168] sm:$0xff]  ;;  %v830_v51 = vld [vmem:[#allocation10 + $0x158] sm:$0xff]  ;;  %v284_v44 = vshrl.u32 %v283_v42, 7 }
  0x9a   :  { %706 = vmatprep.mubr.f32.mxu1 %v3357_v0  ;;  %2512 = vmatprep.subr.bf16.mxu0 %v3426_v54  ;;  %v3493_v58 = vpack.c.bf16 %v832_v48, %v828_v47  ;;  %v3496_v62 = vpack.c.bf16 %v834_v52, %v830_v51  ;;  %v281_v47 = vld [vmem:[%s3862_s3] sm:$0xf]  ;;  %s3358_s3 = smov [#allocation11]  }
  0x9b   :  { %481 = vmatmul.mubr.f32.vlgmr.msra.gmra.mrb[0].mxu0 %v67_v60  ;;  %2544 = vmatprep.subr.bf16.mxu1 %v3428_v57  ;;  %v285_v45 = vsub.s32 0, %v284_v44  ;;  %v289_v48 = vsub.s32 1, %v284_v44  ;;  %v297_v55 = vsub.s32 3, %v284_v44  ;;  %s2278_s26 = sshll.u32 %s3358_s3, 4  ;;  %s2279_s26 = int_to_ptr.vmem [resolvable:$true] %s2278_s26 }
  0x9c   :  { %707 = vmatmul.mubr.f32.vlgmr.msra.gmra.mrb[0].mxu1 %v67_v60  ;;  %2514 = vmatpush1.bf16.msra.mxu0 %v3430_v61  ;;  %v833_v60 = vld [vmem:[#allocation10 + $0x170] sm:$0xff]  ;;  %s3322_s29 = scalar_lea.vmem %s2279_s26, 128  ;;  %p3327_p11 = scmp.lt.s32.totalorder %s2279_s26, %s2279_s26 }
  0x9d   :  { %2546 = vmatpush1.bf16.msra.mxu1 %v3433_v1  ;;  %486 = vmatprep.mubr.f32.mxu0 %v3357_v0  ;;  %v3503_v9 = vpack.c.bf16 %v833_v60, %v829_v59  ;;  %v3583_v51 = vrot.slane %v281_v47, %v289_v48  ;;  %v3587_v8 = vrot.slane %v281_v47, %v297_v55  ;;  %p3323_p10 = scmp.ne.s32.totalorder %s2279_s26, %s3322_s29  ;;  %p3328_p12 = scmp.lt.s32.totalorder %s3322_s29, %s3322_s29 }
  0x9e   :  { %712 = vmatprep.mubr.f32.mxu1 %v3357_v0  ;;  %2516 = vmatprep.subr.bf16.mxu0 %v3437_v4 }
  0x9f   :  { %487 = vmatmul.mubr.f32.gmra.mrb[2].mxu0 %v70_v10  ;;  %2548 = vmatprep.subr.bf16.mxu1 %v3440_v7  ;;  %p3329_p13 = por %p3328_p12, %p3327_p11 }
  0xa0   :  { %713 = vmatmul.mubr.f32.gmra.mrb[2].mxu1 %v70_v10  ;;  %2518 = vmatpush1.bf16.msra.mxu0 %v3443_v11  ;;  %v835_v10 = vld [vmem:[#allocation10 + $0x180] sm:$0xff] }
  0xa1   :  { %2550 = vmatpush1.bf16.msra.mxu1 %v3447_v14  ;;  %492 = vmatprep.mubr.f32.mxu0 %v3357_v0  ;;  %p3330_p0 = pnand %p3329_p13, %p3323_p10 }
  0xa2   :  { %718 = vmatprep.mubr.f32.mxu1 %v3357_v0  ;;  %2520 = vmatprep.subr.bf16.mxu0 %v3451_v17 }
  0xa3   :  { %493 = vmatmul.mubr.f32.gmra.mrb[4].mxu0 %v73_v23  ;;  %2552 = vmatprep.subr.bf16.mxu1 %v3454_v20 }
  0xa4   :  { %719 = vmatmul.mubr.f32.gmra.mrb[4].mxu1 %v73_v23  ;;  %2522 = vmatpush1.bf16.msra.mxu0 %v3457_v24  ;;  %v3513_v23 = vpack.c.bf16 %v839_v12, %v835_v10  ;;  %v293_v10 = vsub.s32 2, %v284_v44 }
  0xa5   :  { %2554 = vmatpush1.bf16.msra.mxu1 %v3461_v27  ;;  %498 = vmatprep.mubr.f32.mxu0 %v3357_v0 }
  0xa6   :  { %724 = vmatprep.mubr.f32.mxu1 %v3357_v0  ;;  %2524 = vmatprep.subr.bf16.mxu0 %v3465_v30  ;;  %v3590_v15 = vrot.slane %v281_v47, %v293_v10 }
  0xa7   :  { %499 = vmatmul.mubr.f32.gmra.mrb[6].mxu0 %v76_v36  ;;  %2556 = vmatprep.subr.bf16.mxu1 %v3468_v33 }
  0xa8   :  { %725 = vmatmul.mubr.f32.gmra.mrb[6].mxu1 %v76_v36  ;;  %2526 = vmatpush1.bf16.msra.mxu0 %v3471_v37  ;;  %v3524_v36 = vpack.c.bf16 %v850_v26, %v846_v25 }
  0xa9   :  { %2558 = vmatpush1.bf16.msra.mxu1 %v3475_v40  ;;  %504 = vmatprep.mubr.f32.mxu0 %v3357_v0 }
  0xaa   :  { %730 = vmatprep.mubr.f32.mxu1 %v3357_v0  ;;  %2528 = vmatprep.subr.bf16.mxu0 %v3479_v43 }
  0xab   :  { %505 = vmatmul.mubr.f32.gmra.mrb[8].mxu0 %v79_v49  ;;  %2560 = vmatprep.subr.bf16.mxu1 %v3482_v46 }
  0xac   :  { %731 = vmatmul.mubr.f32.gmra.mrb[8].mxu1 %v79_v49  ;;  %2530 = vmatpush1.bf16.msra.mxu0 %v3485_v50  ;;  %v3581_v49 = vrot.slane %v281_v47, %v285_v45 }
  0xad   :  { %2562 = vmatpush1.bf16.msra.mxu1 %v3489_v53  ;;  %510 = vmatprep.mubr.f32.mxu0 %v3357_v0 }
  0xae   :  { %736 = vmatprep.mubr.f32.mxu1 %v3357_v0  ;;  %2532 = vmatprep.subr.bf16.mxu0 %v3493_v58 }
  0xaf   :  { %511 = vmatmul.mubr.f32.gmra.mrb[10].mxu0 %v82_v3  ;;  %2564 = vmatprep.subr.bf16.mxu1 %v3496_v62 }
  0xb0   :  { %737 = vmatmul.mubr.f32.gmra.mrb[10].mxu1 %v82_v3  ;;  %2534 = vmatpush1.bf16.msra.mxu0 %v3499_v5 }
  0xb1   :  { %2566 = vmatpush1.bf16.msra.mxu1 %v3503_v9  ;;  %516 = vmatprep.mubr.f32.mxu0 %v3357_v0 }
  0xb2   :  { %742 = vmatprep.mubr.f32.mxu1 %v3357_v0  ;;  %2536 = vmatprep.subr.bf16.mxu0 %v3507_v13 }
  0xb3   :  { %517 = vmatmul.mubr.f32.gmra.mrb[12].mxu0 %v85_v22  ;;  %2568 = vmatprep.subr.bf16.mxu1 %v3510_v18 }
  0xb4   :  { %743 = vmatmul.mubr.f32.gmra.mrb[12].mxu1 %v85_v22  ;;  %2538 = vmatpush1.bf16.msra.mxu0 %v3513_v23 }
  0xb5   :  { %2570 = vmatpush1.bf16.msra.mxu1 %v3517_v28  ;;  %522 = vmatprep.mubr.f32.mxu0 %v3357_v0 }
  0xb6   :  { %748 = vmatprep.mubr.f32.mxu1 %v3357_v0  ;;  %2540 = vmatprep.subr.bf16.mxu0 %v3521_v32 }
  0xb7   :  { %523 = vmatmul.mubr.f32.gmra.mrb[14].mxu0 %v88_v38  ;;  %2572 = vmatprep.subr.bf16.mxu1 %v3524_v36 }
  0xb8   :  { %749 = vmatmul.mubr.f32.gmra.mrb[14].mxu1 %v88_v38  ;;  %2542 = vmatpush1.bf16.msra.mxu0 %v3527_v39 }
  0xb9   :  { %2574 = vmatpush1.bf16.msra.mxu1 %v3531_v41  ;;  %924 = vmatprep.mubr.f32.mxu0 %v3357_v0 }
  0xba   :  { %995 = vmatprep.mubr.f32.mxu1 %v3357_v0  ;;  %2576 = vmatprep.subr.bf16.mxu0 %v3426_v54 }
  0xbb   :  { %925 = vmatmul.mubr.f32.vlgmr.msra.gmra.mrb[0].mxu0 %v3357_v0  ;;  %2608 = vmatprep.subr.bf16.mxu1 %v3428_v57 }
  0xbc   :  { %996 = vmatmul.mubr.f32.vlgmr.msra.gmra.mrb[0].mxu1 %v3357_v0  ;;  %2578 = vmatpush1.bf16.msra.mxu0 %v3430_v61 }
  0xbd   :  { %2610 = vmatpush1.bf16.msra.mxu1 %v3433_v1  ;;  %2580 = vmatprep.subr.bf16.mxu0 %v3437_v4 }
  0xbe   :  { %2612 = vmatprep.subr.bf16.mxu1 %v3440_v7  ;;  %1101 = vmatprep.mubr.f32.mxu0 %v3357_v0 }
  0xbf   :  { %1172 = vmatprep.mubr.f32.mxu1 %v3357_v0 }
  0xc0   :  { %2582 = vmatpush1.bf16.msra.mxu0 %v3443_v11 }
  0xc1   :  { %2614 = vmatpush1.bf16.msra.mxu1 %v3447_v14  ;;  %2584 = vmatprep.subr.bf16.mxu0 %v3451_v17 }
  0xc2   :  { %2616 = vmatprep.subr.bf16.mxu1 %v3454_v20 }
  0xc4   :  { %2586 = vmatpush1.bf16.msra.mxu0 %v3457_v24 }
  0xc5   :  { %2618 = vmatpush1.bf16.msra.mxu1 %v3461_v27  ;;  %2588 = vmatprep.subr.bf16.mxu0 %v3465_v30 }
  0xc6   :  { %2620 = vmatprep.subr.bf16.mxu1 %v3468_v33 }
  0xc8   :  { %2590 = vmatpush1.bf16.msra.mxu0 %v3471_v37 }
  0xc9   :  { %2622 = vmatpush1.bf16.msra.mxu1 %v3475_v40  ;;  %2592 = vmatprep.subr.bf16.mxu0 %v3479_v43 }
  0xca   :  { %2624 = vmatprep.subr.bf16.mxu1 %v3482_v46 }
  0xcc   :  { %2594 = vmatpush1.bf16.msra.mxu0 %v3485_v50 }
  0xcd   :  { %2626 = vmatpush1.bf16.msra.mxu1 %v3489_v53  ;;  %2596 = vmatprep.subr.bf16.mxu0 %v3493_v58 }
  0xce   :  { %2628 = vmatprep.subr.bf16.mxu1 %v3496_v62 }
  0xd0   :  { %2598 = vmatpush1.bf16.msra.mxu0 %v3499_v5 }
  0xd1   :  { %2630 = vmatpush1.bf16.msra.mxu1 %v3503_v9  ;;  %2600 = vmatprep.subr.bf16.mxu0 %v3507_v13 }
  0xd2   :  { %2632 = vmatprep.subr.bf16.mxu1 %v3510_v18 }
  0xd4   :  { %2602 = vmatpush1.bf16.msra.mxu0 %v3513_v23 }
  0xd5   :  { %2634 = vmatpush1.bf16.msra.mxu1 %v3517_v28  ;;  %2604 = vmatprep.subr.bf16.mxu0 %v3521_v32 }
  0xd6   :  { %2636 = vmatprep.subr.bf16.mxu1 %v3524_v36 }
  0xd8   :  { %2606 = vmatpush1.bf16.msra.mxu0 %v3527_v39 }
  0xd9   :  { %2638 = vmatpush1.bf16.msra.mxu1 %v3531_v41  ;;  %2640 = vmatprep.subr.bf16.mxu0 %v3426_v54 }
  0xda   :  { %2672 = vmatprep.subr.bf16.mxu1 %v3428_v57 }
 0x18e   :  { %v926_v52 = vpop.f32.mrb[0].mxu0 }
 0x18f   :  { %v3023_v56 = vadd.f32 %v926_v52, %v3581_v49  ;;  %v997_v59 = vpop.f32.mrb[0].mxu1  ;;  %v928_v60 = vpop.f32.mrb[1].mxu0 }
 0x190   :  { %v3024_v63 = vadd.f32 %v928_v60, %v3583_v51  ;;  %v999_v2 = vpop.f32.mrb[1].mxu1  ;;  %v3039_v19 = vadd.f32 %v997_v59, %v3590_v15 }
 0x191   :  { %v2295_v3 = vmul.f32 -1.442695, %v3023_v56  ;;  %v3040_v12 = vadd.f32 %v999_v2, %v3587_v8 }
 0x192   :  { %v2296_v6 = vmul.f32 -1.442695, %v3024_v63 }
 0x193   :  { %3128 = vpow2.f32 %v2295_v3  ;;  %v2297_v16 = vmul.f32 -1.442695, %v3040_v12 }
 0x194   :  { %3130 = vpow2.f32 %v2296_v6 }
 0x195   :  { %3132 = vpow2.f32 %v2297_v16 }
 0x196   :  { %3134 = vtanh.f32 %v3039_v19 }
 0x19d   :  { %v3129_v21 = vpop.eup %3128 }
 0x19e   :  { %v3131_v22 = vpop.eup %3130  ;;  %v1009_v25 = vadd.f32 1.0, %v3129_v21 }
 0x19f   :  { %v1015_v26 = vadd.f32 1.0, %v3131_v22  ;;  %v3133_v29 = vpop.eup %3132 }
 0x1a0   :  { %3136 = vrcp.f32 %v1009_v25  ;;  %v3135_v31 = vpop.eup %3134  ;;  %v1022_v42 = vadd.f32 1.0, %v3133_v29 }
 0x1a1   :  { %3138 = vrcp.f32 %v1015_v26 }
 0x1a2   :  { %3140 = vrcp.f32 %v1022_v42 }
 0x1aa   :  { %v3137_v34 = vpop.eup %3136 }
 0x1ab   :  { %v3139_v35 = vpop.eup %3138  ;;  %v1026_v38 = vmul.f32 %v3137_v34, %v3135_v31 }
 0x1ac   :  { %v1025_v44 = vmul.f32 0.0, %v3139_v35  ;;  %v3141_v47 = vpop.eup %3140 }
 0x1ae   :  { %v3593_v45 = vadd.f32 %v1026_v38, %v1025_v44 }
 0x1b0   :  { %3142 = vtanh.f32 %v3593_v45 }
 0x1ba   :  { %v3143_v48 = vpop.eup %3142 }
 0x1bb   :  { %v1029_v52 = vmul.f32 %v3143_v48, %v3141_v47 }
 0x1bd   :  { %1102 = vmatmul.mubr.f32.vlgmr.msra.gmra.mrb[2].mxu0 %v1029_v52  ;;  %1173 = vmatmul.mubr.f32.vlgmr.msra.gmra.mrb[2].mxu1 %v1029_v52 }
 0x1be   :  { %2642 = vmatpush1.bf16.msra.mxu0 %v3430_v61  ;;  %2674 = vmatpush1.bf16.msra.mxu1 %v3433_v1 }
 0x1bf   :  { %2644 = vmatprep.subr.bf16.mxu0 %v3437_v4  ;;  %2676 = vmatprep.subr.bf16.mxu1 %v3440_v7 }
 0x1c0   :  { %1278 = vmatprep.mubr.f32.mxu0 %v3357_v0  ;;  %1349 = vmatprep.mubr.f32.mxu1 %v3357_v0 }
 0x1c2   :  { %2646 = vmatpush1.bf16.msra.mxu0 %v3443_v11  ;;  %2678 = vmatpush1.bf16.msra.mxu1 %v3447_v14 }
 0x1c3   :  { %2648 = vmatprep.subr.bf16.mxu0 %v3451_v17  ;;  %2680 = vmatprep.subr.bf16.mxu1 %v3454_v20 }
 0x1c6   :  { %2650 = vmatpush1.bf16.msra.mxu0 %v3457_v24  ;;  %2682 = vmatpush1.bf16.msra.mxu1 %v3461_v27 }
 0x1c7   :  { %2652 = vmatprep.subr.bf16.mxu0 %v3465_v30  ;;  %2684 = vmatprep.subr.bf16.mxu1 %v3468_v33 }
 0x1ca   :  { %2654 = vmatpush1.bf16.msra.mxu0 %v3471_v37  ;;  %2686 = vmatpush1.bf16.msra.mxu1 %v3475_v40 }
 0x1cb   :  { %2656 = vmatprep.subr.bf16.mxu0 %v3479_v43  ;;  %2688 = vmatprep.subr.bf16.mxu1 %v3482_v46 }
 0x1ce   :  { %2658 = vmatpush1.bf16.msra.mxu0 %v3485_v50  ;;  %2690 = vmatpush1.bf16.msra.mxu1 %v3489_v53 }
 0x1cf   :  { %2660 = vmatprep.subr.bf16.mxu0 %v3493_v58  ;;  %2692 = vmatprep.subr.bf16.mxu1 %v3496_v62 }
 0x1d2   :  { %2662 = vmatpush1.bf16.msra.mxu0 %v3499_v5  ;;  %2694 = vmatpush1.bf16.msra.mxu1 %v3503_v9 }
 0x1d3   :  { %2664 = vmatprep.subr.bf16.mxu0 %v3507_v13  ;;  %2696 = vmatprep.subr.bf16.mxu1 %v3510_v18 }
 0x1d6   :  { %2666 = vmatpush1.bf16.msra.mxu0 %v3513_v23  ;;  %2698 = vmatpush1.bf16.msra.mxu1 %v3517_v28 }
 0x1d7   :  { %2668 = vmatprep.subr.bf16.mxu0 %v3521_v32  ;;  %2700 = vmatprep.subr.bf16.mxu1 %v3524_v36 }
 0x1da   :  { %2670 = vmatpush1.bf16.msra.mxu0 %v3527_v39  ;;  %2702 = vmatpush1.bf16.msra.mxu1 %v3531_v41 }
 0x1db   :  { %2704 = vmatprep.subr.bf16.mxu0 %v3426_v54  ;;  %2736 = vmatprep.subr.bf16.mxu1 %v3428_v57 }
 0x290   :  { %v1103_v55 = vpop.f32.mrb[2].mxu0  ;;  %v1174_v56 = vpop.f32.mrb[2].mxu1 }
 0x291   :  { %v3025_v59 = vadd.f32 %v1103_v55, %v3581_v49  ;;  %v1105_v60 = vpop.f32.mrb[3].mxu0  ;;  %v1176_v63 = vpop.f32.mrb[3].mxu1  ;;  %v3041_v16 = vadd.f32 %v1174_v56, %v3590_v15 }
 0x292   :  { %v3026_v2 = vadd.f32 %v1105_v60, %v3583_v51  ;;  %v3042_v10 = vadd.f32 %v1176_v63, %v3587_v8 }
 0x293   :  { %v2298_v3 = vmul.f32 -1.442695, %v3025_v59 }
 0x294   :  { %v2299_v6 = vmul.f32 -1.442695, %v3026_v2  ;;  %v2300_v12 = vmul.f32 -1.442695, %v3042_v10 }
 0x295   :  { %3144 = vpow2.f32 %v2298_v3 }
 0x296   :  { %3146 = vpow2.f32 %v2299_v6 }
 0x297   :  { %3148 = vpow2.f32 %v2300_v12 }
 0x298   :  { %3150 = vtanh.f32 %v3041_v16 }
 0x29f   :  { %v3145_v19 = vpop.eup %3144 }
 0x2a0   :  { %v3147_v21 = vpop.eup %3146  ;;  %v1186_v22 = vadd.f32 1.0, %v3145_v19 }
 0x2a1   :  { %v1192_v25 = vadd.f32 1.0, %v3147_v21  ;;  %v3149_v26 = vpop.eup %3148 }
 0x2a2   :  { %3152 = vrcp.f32 %v1186_v22  ;;  %v3151_v29 = vpop.eup %3150  ;;  %v1199_v38 = vadd.f32 1.0, %v3149_v26 }
 0x2a3   :  { %3154 = vrcp.f32 %v1192_v25 }
 0x2a4   :  { %3156 = vrcp.f32 %v1199_v38 }
 0x2ac   :  { %v3153_v31 = vpop.eup %3152 }
 0x2ad   :  { %v3155_v34 = vpop.eup %3154  ;;  %v1203_v35 = vmul.f32 %v3153_v31, %v3151_v29 }
 0x2ae   :  { %v1202_v42 = vmul.f32 %v3155_v34, %v3593_v45  ;;  %v3157_v47 = vpop.eup %3156 }
 0x2b0   :  { %v3635_v44 = vadd.f32 %v1203_v35, %v1202_v42 }
 0x2b2   :  { %3158 = vtanh.f32 %v3635_v44 }
 0x2bc   :  { %v3159_v48 = vpop.eup %3158 }
 0x2bd   :  { %v1206_v52 = vmul.f32 %v3159_v48, %v3157_v47 }
 0x2bf   :  { %1279 = vmatmul.mubr.f32.vlgmr.msra.gmra.mrb[4].mxu0 %v1206_v52  ;;  %1350 = vmatmul.mubr.f32.vlgmr.msra.gmra.mrb[4].mxu1 %v1206_v52 }
 0x2c0   :  { %2706 = vmatpush1.bf16.msra.mxu0 %v3430_v61  ;;  %2738 = vmatpush1.bf16.msra.mxu1 %v3433_v1 }
 0x2c1   :  { %2708 = vmatprep.subr.bf16.mxu0 %v3437_v4  ;;  %2740 = vmatprep.subr.bf16.mxu1 %v3440_v7 }
 0x2c2   :  { %1455 = vmatprep.mubr.f32.mxu0 %v3357_v0  ;;  %1526 = vmatprep.mubr.f32.mxu1 %v3357_v0 }
 0x2c4   :  { %2710 = vmatpush1.bf16.msra.mxu0 %v3443_v11  ;;  %2742 = vmatpush1.bf16.msra.mxu1 %v3447_v14 }
 0x2c5   :  { %2712 = vmatprep.subr.bf16.mxu0 %v3451_v17  ;;  %2744 = vmatprep.subr.bf16.mxu1 %v3454_v20 }
 0x2c8   :  { %2714 = vmatpush1.bf16.msra.mxu0 %v3457_v24  ;;  %2746 = vmatpush1.bf16.msra.mxu1 %v3461_v27 }
 0x2c9   :  { %2716 = vmatprep.subr.bf16.mxu0 %v3465_v30  ;;  %2748 = vmatprep.subr.bf16.mxu1 %v3468_v33 }
 0x2cc   :  { %2718 = vmatpush1.bf16.msra.mxu0 %v3471_v37  ;;  %2750 = vmatpush1.bf16.msra.mxu1 %v3475_v40 }
 0x2cd   :  { %2720 = vmatprep.subr.bf16.mxu0 %v3479_v43  ;;  %2752 = vmatprep.subr.bf16.mxu1 %v3482_v46 }
 0x2d0   :  { %2722 = vmatpush1.bf16.msra.mxu0 %v3485_v50  ;;  %2754 = vmatpush1.bf16.msra.mxu1 %v3489_v53 }
 0x2d1   :  { %2724 = vmatprep.subr.bf16.mxu0 %v3493_v58  ;;  %2756 = vmatprep.subr.bf16.mxu1 %v3496_v62 }
 0x2d4   :  { %2726 = vmatpush1.bf16.msra.mxu0 %v3499_v5  ;;  %2758 = vmatpush1.bf16.msra.mxu1 %v3503_v9 }
 0x2d5   :  { %2728 = vmatprep.subr.bf16.mxu0 %v3507_v13  ;;  %2760 = vmatprep.subr.bf16.mxu1 %v3510_v18 }
 0x2d8   :  { %2730 = vmatpush1.bf16.msra.mxu0 %v3513_v23  ;;  %2762 = vmatpush1.bf16.msra.mxu1 %v3517_v28 }
 0x2d9   :  { %2732 = vmatprep.subr.bf16.mxu0 %v3521_v32  ;;  %2764 = vmatprep.subr.bf16.mxu1 %v3524_v36 }
 0x2dc   :  { %2734 = vmatpush1.bf16.msra.mxu0 %v3527_v39  ;;  %2766 = vmatpush1.bf16.msra.mxu1 %v3531_v41 }
 0x2dd   :  { %2768 = vmatprep.subr.bf16.mxu0 %v3426_v54  ;;  %2800 = vmatprep.subr.bf16.mxu1 %v3428_v57 }
 0x392   :  { %v1280_v45 = vpop.f32.mrb[4].mxu0  ;;  %v1351_v55 = vpop.f32.mrb[4].mxu1 }
 0x393   :  { %v3027_v56 = vadd.f32 %v1280_v45, %v3581_v49  ;;  %v1282_v59 = vpop.f32.mrb[5].mxu0  ;;  %v1353_v60 = vpop.f32.mrb[5].mxu1  ;;  %v3043_v12 = vadd.f32 %v1351_v55, %v3590_v15 }
 0x394   :  { %v3028_v63 = vadd.f32 %v1282_v59, %v3583_v51  ;;  %v3044_v6 = vadd.f32 %v1353_v60, %v3587_v8 }
 0x395   :  { %v2301_v2 = vmul.f32 -1.442695, %v3027_v56 }
 0x396   :  { %v2302_v3 = vmul.f32 -1.442695, %v3028_v63  ;;  %v2303_v10 = vmul.f32 -1.442695, %v3044_v6 }
 0x397   :  { %3160 = vpow2.f32 %v2301_v2 }
 0x398   :  { %3162 = vpow2.f32 %v2302_v3 }
 0x399   :  { %3164 = vpow2.f32 %v2303_v10 }
 0x39a   :  { %3166 = vtanh.f32 %v3043_v12 }
 0x3a1   :  { %v3161_v16 = vpop.eup %3160 }
 0x3a2   :  { %v3163_v19 = vpop.eup %3162  ;;  %v1363_v21 = vadd.f32 1.0, %v3161_v16 }
 0x3a3   :  { %v1369_v22 = vadd.f32 1.0, %v3163_v19  ;;  %v3165_v25 = vpop.eup %3164 }
 0x3a4   :  { %3168 = vrcp.f32 %v1363_v21  ;;  %v3167_v26 = vpop.eup %3166  ;;  %v1376_v35 = vadd.f32 1.0, %v3165_v25 }
 0x3a5   :  { %3170 = vrcp.f32 %v1369_v22 }
 0x3a6   :  { %3172 = vrcp.f32 %v1376_v35 }
 0x3ae   :  { %v3169_v29 = vpop.eup %3168 }
 0x3af   :  { %v3171_v31 = vpop.eup %3170  ;;  %v1380_v34 = vmul.f32 %v3169_v29, %v3167_v26 }
 0x3b0   :  { %v1379_v38 = vmul.f32 %v3171_v31, %v3635_v44  ;;  %v3173_v47 = vpop.eup %3172 }
 0x3b2   :  { %v3677_v42 = vadd.f32 %v1380_v34, %v1379_v38 }
 0x3b4   :  { %3174 = vtanh.f32 %v3677_v42 }
 0x3be   :  { %v3175_v48 = vpop.eup %3174 }
 0x3bf   :  { %v1383_v52 = vmul.f32 %v3175_v48, %v3173_v47 }
 0x3c1   :  { %1456 = vmatmul.mubr.f32.vlgmr.msra.gmra.mrb[6].mxu0 %v1383_v52  ;;  %1527 = vmatmul.mubr.f32.vlgmr.msra.gmra.mrb[6].mxu1 %v1383_v52 }
 0x3c2   :  { %2770 = vmatpush1.bf16.msra.mxu0 %v3430_v61  ;;  %2802 = vmatpush1.bf16.msra.mxu1 %v3433_v1 }
 0x3c3   :  { %2772 = vmatprep.subr.bf16.mxu0 %v3437_v4  ;;  %2804 = vmatprep.subr.bf16.mxu1 %v3440_v7 }
 0x3c4   :  { %1632 = vmatprep.mubr.f32.mxu0 %v3357_v0  ;;  %1703 = vmatprep.mubr.f32.mxu1 %v3357_v0 }
 0x3c6   :  { %2774 = vmatpush1.bf16.msra.mxu0 %v3443_v11  ;;  %2806 = vmatpush1.bf16.msra.mxu1 %v3447_v14 }
 0x3c7   :  { %2776 = vmatprep.subr.bf16.mxu0 %v3451_v17  ;;  %2808 = vmatprep.subr.bf16.mxu1 %v3454_v20 }
 0x3ca   :  { %2778 = vmatpush1.bf16.msra.mxu0 %v3457_v24  ;;  %2810 = vmatpush1.bf16.msra.mxu1 %v3461_v27 }
 0x3cb   :  { %2780 = vmatprep.subr.bf16.mxu0 %v3465_v30  ;;  %2812 = vmatprep.subr.bf16.mxu1 %v3468_v33 }
 0x3ce   :  { %2782 = vmatpush1.bf16.msra.mxu0 %v3471_v37  ;;  %2814 = vmatpush1.bf16.msra.mxu1 %v3475_v40 }
 0x3cf   :  { %2784 = vmatprep.subr.bf16.mxu0 %v3479_v43  ;;  %2816 = vmatprep.subr.bf16.mxu1 %v3482_v46 }
 0x3d2   :  { %2786 = vmatpush1.bf16.msra.mxu0 %v3485_v50  ;;  %2818 = vmatpush1.bf16.msra.mxu1 %v3489_v53 }
 0x3d3   :  { %2788 = vmatprep.subr.bf16.mxu0 %v3493_v58  ;;  %2820 = vmatprep.subr.bf16.mxu1 %v3496_v62 }
 0x3d6   :  { %2790 = vmatpush1.bf16.msra.mxu0 %v3499_v5  ;;  %2822 = vmatpush1.bf16.msra.mxu1 %v3503_v9 }
 0x3d7   :  { %2792 = vmatprep.subr.bf16.mxu0 %v3507_v13  ;;  %2824 = vmatprep.subr.bf16.mxu1 %v3510_v18 }
 0x3da   :  { %2794 = vmatpush1.bf16.msra.mxu0 %v3513_v23  ;;  %2826 = vmatpush1.bf16.msra.mxu1 %v3517_v28 }
 0x3db   :  { %2796 = vmatprep.subr.bf16.mxu0 %v3521_v32  ;;  %2828 = vmatprep.subr.bf16.mxu1 %v3524_v36 }
 0x3de   :  { %2798 = vmatpush1.bf16.msra.mxu0 %v3527_v39  ;;  %2830 = vmatpush1.bf16.msra.mxu1 %v3531_v41 }
 0x3df   :  { %2832 = vmatprep.subr.bf16.mxu0 %v3426_v54  ;;  %2864 = vmatprep.subr.bf16.mxu1 %v3428_v57 }
 0x494   :  { %v1457_v44 = vpop.f32.mrb[6].mxu0  ;;  %v1528_v45 = vpop.f32.mrb[6].mxu1 }
 0x495   :  { %v3029_v55 = vadd.f32 %v1457_v44, %v3581_v49  ;;  %v1459_v56 = vpop.f32.mrb[7].mxu0  ;;  %v1530_v59 = vpop.f32.mrb[7].mxu1  ;;  %v3045_v10 = vadd.f32 %v1528_v45, %v3590_v15 }
 0x496   :  { %v3030_v60 = vadd.f32 %v1459_v56, %v3583_v51  ;;  %v3046_v3 = vadd.f32 %v1530_v59, %v3587_v8 }
 0x497   :  { %v2304_v63 = vmul.f32 -1.442695, %v3029_v55 }
 0x498   :  { %v2305_v2 = vmul.f32 -1.442695, %v3030_v60  ;;  %v2306_v6 = vmul.f32 -1.442695, %v3046_v3 }
 0x499   :  { %3176 = vpow2.f32 %v2304_v63 }
 0x49a   :  { %3178 = vpow2.f32 %v2305_v2 }
 0x49b   :  { %3180 = vpow2.f32 %v2306_v6 }
 0x49c   :  { %3182 = vtanh.f32 %v3045_v10 }
 0x4a3   :  { %v3177_v12 = vpop.eup %3176 }
 0x4a4   :  { %v3179_v16 = vpop.eup %3178  ;;  %v1540_v19 = vadd.f32 1.0, %v3177_v12 }
 0x4a5   :  { %v1546_v21 = vadd.f32 1.0, %v3179_v16  ;;  %v3181_v22 = vpop.eup %3180 }
 0x4a6   :  { %3184 = vrcp.f32 %v1540_v19  ;;  %v3183_v25 = vpop.eup %3182  ;;  %v1553_v34 = vadd.f32 1.0, %v3181_v22 }
 0x4a7   :  { %3186 = vrcp.f32 %v1546_v21 }
 0x4a8   :  { %3188 = vrcp.f32 %v1553_v34 }
 0x4b0   :  { %v3185_v26 = vpop.eup %3184 }
 0x4b1   :  { %v3187_v29 = vpop.eup %3186  ;;  %v1557_v31 = vmul.f32 %v3185_v26, %v3183_v25 }
 0x4b2   :  { %v1556_v35 = vmul.f32 %v3187_v29, %v3677_v42  ;;  %v3189_v47 = vpop.eup %3188 }
 0x4b4   :  { %v3719_v38 = vadd.f32 %v1557_v31, %v1556_v35 }
 0x4b6   :  { %3190 = vtanh.f32 %v3719_v38 }
 0x4c0   :  { %v3191_v48 = vpop.eup %3190 }
 0x4c1   :  { %v1560_v52 = vmul.f32 %v3191_v48, %v3189_v47 }
 0x4c3   :  { %1633 = vmatmul.mubr.f32.vlgmr.msra.gmra.mrb[8].mxu0 %v1560_v52  ;;  %1704 = vmatmul.mubr.f32.vlgmr.msra.gmra.mrb[8].mxu1 %v1560_v52 }
 0x4c4   :  { %2834 = vmatpush1.bf16.msra.mxu0 %v3430_v61  ;;  %2866 = vmatpush1.bf16.msra.mxu1 %v3433_v1 }
 0x4c5   :  { %2836 = vmatprep.subr.bf16.mxu0 %v3437_v4  ;;  %2868 = vmatprep.subr.bf16.mxu1 %v3440_v7 }
 0x4c6   :  { %1809 = vmatprep.mubr.f32.mxu0 %v3357_v0  ;;  %1880 = vmatprep.mubr.f32.mxu1 %v3357_v0 }
 0x4c8   :  { %2838 = vmatpush1.bf16.msra.mxu0 %v3443_v11  ;;  %2870 = vmatpush1.bf16.msra.mxu1 %v3447_v14 }
 0x4c9   :  { %2840 = vmatprep.subr.bf16.mxu0 %v3451_v17  ;;  %2872 = vmatprep.subr.bf16.mxu1 %v3454_v20 }
 0x4cc   :  { %2842 = vmatpush1.bf16.msra.mxu0 %v3457_v24  ;;  %2874 = vmatpush1.bf16.msra.mxu1 %v3461_v27 }
 0x4cd   :  { %2844 = vmatprep.subr.bf16.mxu0 %v3465_v30  ;;  %2876 = vmatprep.subr.bf16.mxu1 %v3468_v33 }
 0x4d0   :  { %2846 = vmatpush1.bf16.msra.mxu0 %v3471_v37  ;;  %2878 = vmatpush1.bf16.msra.mxu1 %v3475_v40 }
 0x4d1   :  { %2848 = vmatprep.subr.bf16.mxu0 %v3479_v43  ;;  %2880 = vmatprep.subr.bf16.mxu1 %v3482_v46 }
 0x4d4   :  { %2850 = vmatpush1.bf16.msra.mxu0 %v3485_v50  ;;  %2882 = vmatpush1.bf16.msra.mxu1 %v3489_v53 }
 0x4d5   :  { %2852 = vmatprep.subr.bf16.mxu0 %v3493_v58  ;;  %2884 = vmatprep.subr.bf16.mxu1 %v3496_v62 }
 0x4d8   :  { %2854 = vmatpush1.bf16.msra.mxu0 %v3499_v5  ;;  %2886 = vmatpush1.bf16.msra.mxu1 %v3503_v9 }
 0x4d9   :  { %2856 = vmatprep.subr.bf16.mxu0 %v3507_v13  ;;  %2888 = vmatprep.subr.bf16.mxu1 %v3510_v18 }
 0x4dc   :  { %2858 = vmatpush1.bf16.msra.mxu0 %v3513_v23  ;;  %2890 = vmatpush1.bf16.msra.mxu1 %v3517_v28 }
 0x4dd   :  { %2860 = vmatprep.subr.bf16.mxu0 %v3521_v32  ;;  %2892 = vmatprep.subr.bf16.mxu1 %v3524_v36 }
 0x4e0   :  { %2862 = vmatpush1.bf16.msra.mxu0 %v3527_v39  ;;  %2894 = vmatpush1.bf16.msra.mxu1 %v3531_v41 }
 0x4e1   :  { %2896 = vmatprep.subr.bf16.mxu0 %v3426_v54  ;;  %2928 = vmatprep.subr.bf16.mxu1 %v3428_v57 }
 0x596   :  { %v1634_v42 = vpop.f32.mrb[8].mxu0  ;;  %v1705_v44 = vpop.f32.mrb[8].mxu1 }
 0x597   :  { %v3031_v45 = vadd.f32 %v1634_v42, %v3581_v49  ;;  %v1636_v55 = vpop.f32.mrb[9].mxu0  ;;  %v1707_v56 = vpop.f32.mrb[9].mxu1  ;;  %v3047_v6 = vadd.f32 %v1705_v44, %v3590_v15 }
 0x598   :  { %v3032_v59 = vadd.f32 %v1636_v55, %v3583_v51  ;;  %v3048_v2 = vadd.f32 %v1707_v56, %v3587_v8 }
 0x599   :  { %v2307_v60 = vmul.f32 -1.442695, %v3031_v45 }
 0x59a   :  { %v2308_v63 = vmul.f32 -1.442695, %v3032_v59  ;;  %v2309_v3 = vmul.f32 -1.442695, %v3048_v2 }
 0x59b   :  { %3192 = vpow2.f32 %v2307_v60 }
 0x59c   :  { %3194 = vpow2.f32 %v2308_v63 }
 0x59d   :  { %3196 = vpow2.f32 %v2309_v3 }
 0x59e   :  { %3198 = vtanh.f32 %v3047_v6 }
 0x5a5   :  { %v3193_v10 = vpop.eup %3192 }
 0x5a6   :  { %v3195_v12 = vpop.eup %3194  ;;  %v1717_v16 = vadd.f32 1.0, %v3193_v10 }
 0x5a7   :  { %v1723_v19 = vadd.f32 1.0, %v3195_v12  ;;  %v3197_v21 = vpop.eup %3196 }
 0x5a8   :  { %3200 = vrcp.f32 %v1717_v16  ;;  %v3199_v22 = vpop.eup %3198  ;;  %v1730_v31 = vadd.f32 1.0, %v3197_v21 }
 0x5a9   :  { %3202 = vrcp.f32 %v1723_v19 }
 0x5aa   :  { %3204 = vrcp.f32 %v1730_v31 }
 0x5b2   :  { %v3201_v25 = vpop.eup %3200 }
 0x5b3   :  { %v3203_v26 = vpop.eup %3202  ;;  %v1734_v29 = vmul.f32 %v3201_v25, %v3199_v22 }
 0x5b4   :  { %v1733_v34 = vmul.f32 %v3203_v26, %v3719_v38  ;;  %v3205_v47 = vpop.eup %3204 }
 0x5b6   :  { %v3761_v35 = vadd.f32 %v1734_v29, %v1733_v34 }
 0x5b8   :  { %3206 = vtanh.f32 %v3761_v35 }
 0x5c2   :  { %v3207_v48 = vpop.eup %3206 }
 0x5c3   :  { %v1737_v52 = vmul.f32 %v3207_v48, %v3205_v47 }
 0x5c5   :  { %1810 = vmatmul.mubr.f32.vlgmr.msra.gmra.mrb[10].mxu0 %v1737_v52  ;;  %1881 = vmatmul.mubr.f32.vlgmr.msra.gmra.mrb[10].mxu1 %v1737_v52 }
 0x5c6   :  { %2898 = vmatpush1.bf16.msra.mxu0 %v3430_v61  ;;  %2930 = vmatpush1.bf16.msra.mxu1 %v3433_v1 }
 0x5c7   :  { %2900 = vmatprep.subr.bf16.mxu0 %v3437_v4  ;;  %2932 = vmatprep.subr.bf16.mxu1 %v3440_v7 }
 0x5c8   :  { %1986 = vmatprep.mubr.f32.mxu0 %v3357_v0  ;;  %2057 = vmatprep.mubr.f32.mxu1 %v3357_v0 }
 0x5ca   :  { %2902 = vmatpush1.bf16.msra.mxu0 %v3443_v11  ;;  %2934 = vmatpush1.bf16.msra.mxu1 %v3447_v14 }
 0x5cb   :  { %2904 = vmatprep.subr.bf16.mxu0 %v3451_v17  ;;  %2936 = vmatprep.subr.bf16.mxu1 %v3454_v20 }
 0x5ce   :  { %2906 = vmatpush1.bf16.msra.mxu0 %v3457_v24  ;;  %2938 = vmatpush1.bf16.msra.mxu1 %v3461_v27 }
 0x5cf   :  { %2908 = vmatprep.subr.bf16.mxu0 %v3465_v30  ;;  %2940 = vmatprep.subr.bf16.mxu1 %v3468_v33 }
 0x5d2   :  { %2910 = vmatpush1.bf16.msra.mxu0 %v3471_v37  ;;  %2942 = vmatpush1.bf16.msra.mxu1 %v3475_v40 }
 0x5d3   :  { %2912 = vmatprep.subr.bf16.mxu0 %v3479_v43  ;;  %2944 = vmatprep.subr.bf16.mxu1 %v3482_v46 }
 0x5d6   :  { %2914 = vmatpush1.bf16.msra.mxu0 %v3485_v50  ;;  %2946 = vmatpush1.bf16.msra.mxu1 %v3489_v53 }
 0x5d7   :  { %2916 = vmatprep.subr.bf16.mxu0 %v3493_v58  ;;  %2948 = vmatprep.subr.bf16.mxu1 %v3496_v62 }
 0x5da   :  { %2918 = vmatpush1.bf16.msra.mxu0 %v3499_v5  ;;  %2950 = vmatpush1.bf16.msra.mxu1 %v3503_v9 }
 0x5db   :  { %2920 = vmatprep.subr.bf16.mxu0 %v3507_v13  ;;  %2952 = vmatprep.subr.bf16.mxu1 %v3510_v18 }
 0x5de   :  { %2922 = vmatpush1.bf16.msra.mxu0 %v3513_v23  ;;  %2954 = vmatpush1.bf16.msra.mxu1 %v3517_v28 }
 0x5df   :  { %2924 = vmatprep.subr.bf16.mxu0 %v3521_v32  ;;  %2956 = vmatprep.subr.bf16.mxu1 %v3524_v36 }
 0x5e2   :  { %2926 = vmatpush1.bf16.msra.mxu0 %v3527_v39  ;;  %2958 = vmatpush1.bf16.msra.mxu1 %v3531_v41 }
 0x5e3   :  { %2960 = vmatprep.subr.bf16.mxu0 %v3426_v54  ;;  %2992 = vmatprep.subr.bf16.mxu1 %v3428_v57 }
 0x698   :  { %v1811_v38 = vpop.f32.mrb[10].mxu0  ;;  %v1882_v42 = vpop.f32.mrb[10].mxu1 }
 0x699   :  { %v3033_v44 = vadd.f32 %v1811_v38, %v3581_v49  ;;  %v1813_v45 = vpop.f32.mrb[11].mxu0  ;;  %v1884_v55 = vpop.f32.mrb[11].mxu1  ;;  %v3049_v3 = vadd.f32 %v1882_v42, %v3590_v15 }
 0x69a   :  { %v3034_v56 = vadd.f32 %v1813_v45, %v3583_v51  ;;  %v3050_v63 = vadd.f32 %v1884_v55, %v3587_v8 }
 0x69b   :  { %v2310_v59 = vmul.f32 -1.442695, %v3033_v44 }
 0x69c   :  { %v2311_v60 = vmul.f32 -1.442695, %v3034_v56  ;;  %v2312_v2 = vmul.f32 -1.442695, %v3050_v63 }
 0x69d   :  { %3208 = vpow2.f32 %v2310_v59 }
 0x69e   :  { %3210 = vpow2.f32 %v2311_v60 }
 0x69f   :  { %3212 = vpow2.f32 %v2312_v2 }
 0x6a0   :  { %3214 = vtanh.f32 %v3049_v3 }
 0x6a7   :  { %v3209_v54 = vpop.eup %3208 }
 0x6a8   :  { %v3211_v6 = vpop.eup %3210  ;;  %v1894_v57 = vadd.f32 1.0, %v3209_v54 }
 0x6a9   :  { %v1900_v10 = vadd.f32 1.0, %v3211_v6  ;;  %v3213_v12 = vpop.eup %3212 }
 0x6aa   :  { %3216 = vrcp.f32 %v1894_v57  ;;  %v3215_v16 = vpop.eup %3214  ;;  %v1907_v25 = vadd.f32 1.0, %v3213_v12 }
 0x6ab   :  { %3218 = vrcp.f32 %v1900_v10 }
 0x6ac   :  { %3220 = vrcp.f32 %v1907_v25 }
 0x6b4   :  { %v3217_v19 = vpop.eup %3216 }
 0x6b5   :  { %v3219_v21 = vpop.eup %3218  ;;  %v1911_v22 = vmul.f32 %v3217_v19, %v3215_v16 }
 0x6b6   :  { %v1910_v26 = vmul.f32 %v3219_v21, %v3761_v35  ;;  %v3221_v31 = vpop.eup %3220 }
 0x6b8   :  { %v3803_v29 = vadd.f32 %v1911_v22, %v1910_v26 }
 0x6ba   :  { %3222 = vtanh.f32 %v3803_v29 }
 0x6c4   :  { %v3223_v34 = vpop.eup %3222 }
 0x6c5   :  { %v1914_v47 = vmul.f32 %v3223_v34, %v3221_v31 }
 0x6c7   :  { %1987 = vmatmul.mubr.f32.vlgmr.msra.gmra.mrb[12].mxu0 %v1914_v47  ;;  %2058 = vmatmul.mubr.f32.vlgmr.msra.gmra.mrb[12].mxu1 %v1914_v47 }
 0x6c8   :  { %2962 = vmatpush1.bf16.msra.mxu0 %v3430_v61  ;;  %2994 = vmatpush1.bf16.msra.mxu1 %v3433_v1 }
 0x6c9   :  { %2964 = vmatprep.subr.bf16.mxu0 %v3437_v4  ;;  %2996 = vmatprep.subr.bf16.mxu1 %v3440_v7 }
 0x6ca   :  { %2163 = vmatprep.mubr.f32.mxu0 %v3357_v0  ;;  %2234 = vmatprep.mubr.f32.mxu1 %v3357_v0 }
 0x6cc   :  { %2966 = vmatpush1.bf16.msra.mxu0 %v3443_v11  ;;  %2998 = vmatpush1.bf16.msra.mxu1 %v3447_v14 }
 0x6cd   :  { %2968 = vmatprep.subr.bf16.mxu0 %v3451_v17  ;;  %3000 = vmatprep.subr.bf16.mxu1 %v3454_v20 }
 0x6d0   :  { %2970 = vmatpush1.bf16.msra.mxu0 %v3457_v24  ;;  %3002 = vmatpush1.bf16.msra.mxu1 %v3461_v27 }
 0x6d1   :  { %2972 = vmatprep.subr.bf16.mxu0 %v3465_v30  ;;  %3004 = vmatprep.subr.bf16.mxu1 %v3468_v33 }
 0x6d4   :  { %2974 = vmatpush1.bf16.msra.mxu0 %v3471_v37  ;;  %3006 = vmatpush1.bf16.msra.mxu1 %v3475_v40 }
 0x6d5   :  { %2976 = vmatprep.subr.bf16.mxu0 %v3479_v43  ;;  %3008 = vmatprep.subr.bf16.mxu1 %v3482_v46 }
 0x6d8   :  { %2978 = vmatpush1.bf16.msra.mxu0 %v3485_v50  ;;  %3010 = vmatpush1.bf16.msra.mxu1 %v3489_v53 }
 0x6d9   :  { %2980 = vmatprep.subr.bf16.mxu0 %v3493_v58  ;;  %3012 = vmatprep.subr.bf16.mxu1 %v3496_v62 }
 0x6dc   :  { %2982 = vmatpush1.bf16.msra.mxu0 %v3499_v5  ;;  %3014 = vmatpush1.bf16.msra.mxu1 %v3503_v9 }
 0x6dd   :  { %2984 = vmatprep.subr.bf16.mxu0 %v3507_v13  ;;  %3016 = vmatprep.subr.bf16.mxu1 %v3510_v18 }
 0x6e0   :  { %2986 = vmatpush1.bf16.msra.mxu0 %v3513_v23  ;;  %3018 = vmatpush1.bf16.msra.mxu1 %v3517_v28 }
 0x6e1   :  { %2988 = vmatprep.subr.bf16.mxu0 %v3521_v32  ;;  %3020 = vmatprep.subr.bf16.mxu1 %v3524_v36 }
 0x6e4   :  { %2990 = vmatpush1.bf16.msra.mxu0 %v3527_v39  ;;  %3022 = vmatpush1.bf16.msra.mxu1 %v3531_v41 }
 0x79a   :  { %v1988_v61 = vpop.f32.mrb[12].mxu0  ;;  %v2059_v0 = vpop.f32.mrb[12].mxu1 }
 0x79b   :  { %v3035_v1 = vadd.f32 %v1988_v61, %v3581_v49  ;;  %v1990_v4 = vpop.f32.mrb[13].mxu0  ;;  %v2061_v7 = vpop.f32.mrb[13].mxu1  ;;  %v3051_v27 = vadd.f32 %v2059_v0, %v3590_v15 }
 0x79c   :  { %v3036_v11 = vadd.f32 %v1990_v4, %v3583_v51  ;;  %v3052_v20 = vadd.f32 %v2061_v7, %v3587_v8 }
 0x79d   :  { %v2313_v14 = vmul.f32 -1.442695, %v3035_v1 }
 0x79e   :  { %v2314_v17 = vmul.f32 -1.442695, %v3036_v11  ;;  %v2315_v24 = vmul.f32 -1.442695, %v3052_v20 }
 0x79f   :  { %3224 = vpow2.f32 %v2313_v14 }
 0x7a0   :  { %3226 = vpow2.f32 %v2314_v17 }
 0x7a1   :  { %3228 = vpow2.f32 %v2315_v24 }
 0x7a2   :  { %3230 = vtanh.f32 %v3051_v27 }
 0x7a9   :  { %v3225_v30 = vpop.eup %3224 }
 0x7aa   :  { %v3227_v33 = vpop.eup %3226  ;;  %v2071_v37 = vadd.f32 1.0, %v3225_v30 }
 0x7ab   :  { %v2077_v40 = vadd.f32 1.0, %v3227_v33  ;;  %v3229_v43 = vpop.eup %3228 }
 0x7ac   :  { %3232 = vrcp.f32 %v2071_v37  ;;  %v3231_v46 = vpop.eup %3230  ;;  %v2084_v62 = vadd.f32 1.0, %v3229_v43 }
 0x7ad   :  { %3234 = vrcp.f32 %v2077_v40 }
 0x7ae   :  { %3236 = vrcp.f32 %v2084_v62 }
 0x7b6   :  { %v3233_v50 = vpop.eup %3232 }
 0x7b7   :  { %v3235_v53 = vpop.eup %3234  ;;  %v2088_v58 = vmul.f32 %v3233_v50, %v3231_v46 }
 0x7b8   :  { %v2087_v5 = vmul.f32 %v3235_v53, %v3803_v29  ;;  %v3237_v13 = vpop.eup %3236 }
 0x7ba   :  { %v2089_v9 = vadd.f32 %v2088_v58, %v2087_v5 }
 0x7bc   :  { %3238 = vtanh.f32 %v2089_v9 }
 0x7c6   :  { %v3239_v18 = vpop.eup %3238 }
 0x7c7   :  { %v2091_v23 = vmul.f32 %v3239_v18, %v3237_v13 }
 0x7c9   :  { %2164 = vmatmul.mubr.f32.vlgmr.msra.gmra.mrb[14].mxu0 %v2091_v23  ;;  %2235 = vmatmul.mubr.f32.vlgmr.msra.gmra.mrb[14].mxu1 %v2091_v23 }
 0x89c   :  { %v2165_v28 = vpop.f32.mrb[14].mxu0  ;;  %v2236_v32 = vpop.f32.mrb[14].mxu1 }
 0x89d   :  { %v3037_v36 = vadd.f32 %v2165_v28, %v3581_v49  ;;  %v2167_v39 = vpop.f32.mrb[15].mxu0  ;;  %v2238_v41 = vpop.f32.mrb[15].mxu1  ;;  %v3053_v44 = vadd.f32 %v2236_v32, %v3590_v15 }
 0x89e   :  { %v3038_v35 = vadd.f32 %v2167_v39, %v3583_v51  ;;  %v3054_v38 = vadd.f32 %v2238_v41, %v3587_v8 }
 0x89f   :  { %v2316_v48 = vmul.f32 -1.442695, %v3037_v36 }
 0x8a0   :  { %v2317_v52 = vmul.f32 -1.442695, %v3038_v35  ;;  %v2318_v42 = vmul.f32 -1.442695, %v3054_v38 }
 0x8a1   :  { %3240 = vpow2.f32 %v2316_v48 }
 0x8a2   :  { %3242 = vpow2.f32 %v2317_v52 }
 0x8a3   :  { %3244 = vpow2.f32 %v2318_v42 }
 0x8a4   :  { %3246 = vtanh.f32 %v3053_v44 }
 0x8ab   :  { %v3241_v45 = vpop.eup %3240 }
 0x8ac   :  { %v3243_v55 = vpop.eup %3242  ;;  %v2248_v56 = vadd.f32 1.0, %v3241_v45 }
 0x8ad   :  { %v2254_v59 = vadd.f32 1.0, %v3243_v55  ;;  %v3245_v49 = vpop.eup %3244 }
 0x8ae   :  { %3248 = vrcp.f32 %v2248_v56  ;;  %v3247_v60 = vpop.eup %3246  ;;  %v2261_v3 = vadd.f32 1.0, %v3245_v49 }
 0x8af   :  { %3250 = vrcp.f32 %v2254_v59 }
 0x8b0   :  { %3252 = vrcp.f32 %v2261_v3 }
 0x8b8   :  { %v3249_v51 = vpop.eup %3248 }
 0x8b9   :  { %v3251_v63 = vpop.eup %3250  ;;  %v2265_v2 = vmul.f32 %v3249_v51, %v3247_v60 }
 0x8ba   :  { %v2264_v54 = vmul.f32 %v3251_v63, %v2089_v9  ;;  %v3253_v8 = vpop.eup %3252 }
 0x8bc   :  { %v2266_v6 = vadd.f32 %v2265_v2, %v2264_v54 }
 0x8be   :  { %3254 = vtanh.f32 %v2266_v6 }
 0x8c8   :  { %v3255_v15 = vpop.eup %3254 }
 0x8c9   :  { %v2268_v57 = vmul.f32 %v3255_v15, %v3253_v8 }
 0x8cb   :  { %2271 = vst [vmem:[#allocation11] sm:$0xff] %v2268_v57 }
 0x8cc   :  { %3333 = shalt.err (!%p3330_p0)
}
 0x8cd   :  { %s3334_s6 = scalar_lea.hbm %s3863_s4, 128 }
 0x8ce   :  { %p3335_p1 = scmp.ne.s32.totalorder %s3863_s4, %s3334_s6  ;;  %p3338_p2 = scmp.lt.u32.totalorder %s3334_s6, %s3863_s4 }
 0x8d0   :  { %p3340_p3 = pnand %p3338_p2, %p3335_p1 }
 0x8d2   :  { %3343 = shalt.err (!%p3340_p3)
}
 0x8d3   :  { %2281 = dma.vmem_to_hbm [thread:$0]  %s2279_s26, 128, %s3863_s4, [#allocation7]  }
 0x8d4   :  { %3348 = dma.done.wait [#allocation7], 128  }
 0x8d5   :  { %3349 = vsyncadd [#allocation7], 4294967168 }
 0x8d6   :  { %2285 = vsyncpa [#allocation6], 1 }
 0x8d7   :  { %2286 = vsyncpa [#allocation9], 1 }
 0x8d8   :  { %2287 = vsyncpa [#allocation7], 1 }

</bundles_post_ra>
